<compile_context>
chip_gen: v7x
topology: tpu7x:2x2x1
jax: 0.10.0
libtpu: 0.0.40
codegen_flags: <defaults>
</compile_context>

<pallas_src>
import functools

import jax
import jax.numpy as jnp
from jax.experimental import pallas as pl
from jax.experimental.pallas import tpu as pltpu


# ----------------------------------------------------------------------------
# Pallas kernel: fused bidirectional GRU over one time chunk, with the input
# projection computed in-kernel.  PyTorch gate order (r, z, n); b_ih and the
# r/z parts of b_hh are pre-folded into the projection bias, b_hn kept apart:
#   gi = x W_ih^T + b_fold                      (chunk matmul, above the loop)
#   r  = sigmoid(gi_r + h W_hr)
#   z  = sigmoid(gi_z + h W_hz)
#   n  = tanh   (gi_n + r * (h W_hn + b_hn))
#   h' = n + z * (h - n)
# Grid = (direction, time_chunk); direction "parallel", time "arbitrary".
# ----------------------------------------------------------------------------
def _bigru_chunk_kernel(*refs, hid_pad, batch_pad, t_chunk, n_streams,
                        t_real, mask_tail):
    x_refs = refs[:n_streams]
    wih_refs = refs[n_streams:2 * n_streams]
    (bfold_ref, whh_ref, bhn_ref, out_ref,
     gi_scratch, h_scratch) = refs[2 * n_streams:]

    Hp = hid_pad
    Bp = batch_pad
    d = pl.program_id(0)          # 0 = forward, 1 = backward
    c = pl.program_id(1)          # chunk index in processing order
    n_chunks = pl.num_programs(1)

    @pl.when(c == 0)
    def _():
        h_scratch[...] = jnp.zeros_like(h_scratch)

    # ---- Fused per-chunk input projection (bf16 MXU, f32 accumulate) ------
    gi = jnp.dot(x_refs[0][...], wih_refs[0][...],
                 preferred_element_type=jnp.float32)
    for s in range(1, n_streams):
        gi = gi + jnp.dot(x_refs[s][...], wih_refs[s][...],
                          preferred_element_type=jnp.float32)
    gi_scratch[...] = gi + bfold_ref[...]          # (t_chunk*Bp, 3Hp) f32

    # Hoisted per-chunk loads / broadcasts (kept out of the time loop).
    whh = whh_ref[...]                             # (Hp, 3Hp) bf16 (stationary)
    b_hn = jnp.broadcast_to(bhn_ref[...], (Bp, Hp))  # (Bp, Hp) f32

    # Chunk position in x time order (backward walks chunks in reverse).
    c_x = c + d * (n_chunks - 1 - 2 * c)

    def step(i, h):
        # Local time index; backward direction walks the chunk in reverse.
        tl = i + d * (t_chunk - 1 - 2 * i)
        row = pl.multiple_of(tl * Bp, Bp)
        g = gi_scratch[pl.ds(row, Bp), :]                     # (Bp, 3Hp) f32
        gh = jnp.dot(h.astype(jnp.bfloat16), whh,
                     preferred_element_type=jnp.float32)      # (Bp, 3Hp) f32
        r = jax.nn.sigmoid(g[:, 0:Hp] + gh[:, 0:Hp])
        z = jax.nn.sigmoid(g[:, Hp:2 * Hp] + gh[:, Hp:2 * Hp])
        n = jnp.tanh(g[:, 2 * Hp:3 * Hp] + r * (gh[:, 2 * Hp:3 * Hp] + b_hn))
        h_new = n + z * (h - n)
        if mask_tail:
            # Skip padded timesteps (keeps h; only emitted when T was padded).
            keep = jnp.where(c_x * t_chunk + tl < t_real, 1.0, 0.0)
            h_new = h + keep * (h_new - h)
        out_ref[pl.ds(row, Bp), :] = h_new.astype(out_ref.dtype)
        return h_new

    unroll = t_chunk if t_chunk <= 16 else 4
    h_final = jax.lax.fori_loop(0, t_chunk, step, h_scratch[...],
                                unroll=unroll)
    h_scratch[...] = h_final


def _pick_t_chunk(T, Bp, in_total, Hp, budget_bytes=36 * 1024 * 1024):
    """Largest time chunk whose pipelined working set fits the VMEM budget."""
    # Per timestep: double-buffered bf16 x-streams and out block + f32 gi scratch.
    per_t = Bp * (2 * in_total * 2 + 2 * Hp * 2 + 3 * Hp * 4)
    fixed = (2 * in_total * 3 * Hp * 2      # wih (double-buffered, bf16)
             + 2 * Hp * 3 * Hp * 2          # whh (double-buffered, bf16)
             + Bp * Hp * 4                  # h scratch (f32)
             + 2 * (3 * Hp + Hp) * 4)       # biases
    avail = max(budget_bytes - fixed, per_t)
    t_chunk = max(1, min(T, avail // per_t))
    if t_chunk > 4:
        t_chunk = (t_chunk // 4) * 4        # keep the partial unroll clean
    return int(t_chunk)


def bigru_layer(x_streams, wih_streams, bfold, whh, bhn, *, hid_pad, batch_pad,
                t_chunk, t_real, vmem_limit_bytes=48 * 1024 * 1024):
    """One fused bidirectional GRU layer.

    x_streams:   tuple of (T_pad*Bp, In_s) bf16  flattened time-major inputs
    wih_streams: tuple of (2, In_s, 3*Hp) bf16   gate-aligned, per-direction
    bfold:       (2, 1, 3*Hp) f32   b_ih + [b_hr, b_hz, 0]
    whh:         (2, Hp, 3*Hp) bf16
    bhn:         (2, 1, Hp)   f32
    returns out: (2, T_pad*Bp, Hp) bf16   direction-major (fwd plane, bwd plane)
    """
    Hp, Bp = hid_pad, batch_pad
    rows = x_streams[0].shape[0]
    chunk_rows = t_chunk * Bp
    n_chunks = rows // chunk_rows
    t_pad = n_chunks * t_chunk
    n_streams = len(x_streams)

    x_specs = [
        pl.BlockSpec((chunk_rows, xs.shape[1]),
                     lambda d, c: (c + d * (n_chunks - 1 - 2 * c), 0))
        for xs in x_streams
    ]
    wih_specs = [
        pl.BlockSpec((pl.Squeezed(), w.shape[1], 3 * Hp),
                     lambda d, c: (d, 0, 0))
        for w in wih_streams
    ]

    out = pl.pallas_call(
        functools.partial(_bigru_chunk_kernel, hid_pad=Hp, batch_pad=Bp,
                          t_chunk=t_chunk, n_streams=n_streams,
                          t_real=t_real, mask_tail=(t_pad != t_real)),
        out_shape=jax.ShapeDtypeStruct((2, t_pad * Bp, Hp), jnp.bfloat16),
        grid=(2, n_chunks),
        in_specs=x_specs + wih_specs + [
            pl.BlockSpec((pl.Squeezed(), 1, 3 * Hp), lambda d, c: (d, 0, 0)),
            pl.BlockSpec((pl.Squeezed(), Hp, 3 * Hp), lambda d, c: (d, 0, 0)),
            pl.BlockSpec((pl.Squeezed(), 1, Hp), lambda d, c: (d, 0, 0)),
        ],
        out_specs=pl.BlockSpec(
            (pl.Squeezed(), chunk_rows, Hp),
            lambda d, c: (d, c + d * (n_chunks - 1 - 2 * c), 0)),
        scratch_shapes=[pltpu.VMEM((chunk_rows, 3 * Hp), jnp.float32),
                        pltpu.VMEM((Bp, Hp), jnp.float32)],
        compiler_params=pltpu.CompilerParams(
            dimension_semantics=("parallel", "arbitrary"),
            vmem_limit_bytes=vmem_limit_bytes),
    )(*x_streams, *wih_streams, bfold, whh, bhn)
    return out


# ----------------------------------------------------------------------------
# Parameters: raw (PyTorch layout) init + one-time prepare (transpose / pad /
# gate-align / bias-fold / bf16 cast).  Done once, NOT per forward call.
# ----------------------------------------------------------------------------
def init_encoder_params(key, en_vocab_size, emb_dim, hid_dim, n_layers):
    params = {}
    k_emb, key = jax.random.split(key)
    params["embedding"] = jax.random.normal(
        k_emb, (en_vocab_size, emb_dim), jnp.float32) * 0.1

    bound = 1.0 / float(jnp.sqrt(hid_dim))
    params["gru"] = []
    for layer in range(n_layers):
        in_size = emb_dim if layer == 0 else 2 * hid_dim
        layer_p = []
        for _direction in range(2):  # 0 = forward, 1 = backward
            key, k1, k2, k3, k4 = jax.random.split(key, 5)
            w_ih = jax.random.uniform(k1, (3 * hid_dim, in_size),
                                      jnp.float32, -bound, bound)
            w_hh = jax.random.uniform(k2, (3 * hid_dim, hid_dim),
                                      jnp.float32, -bound, bound)
            b_ih = jax.random.uniform(k3, (3 * hid_dim,),
                                      jnp.float32, -bound, bound)
            b_hh = jax.random.uniform(k4, (3 * hid_dim,),
                                      jnp.float32, -bound, bound)
            layer_p.append((w_ih, w_hh, b_ih, b_hh))
        params["gru"].append(layer_p)
    return params


def prepare_encoder_params(raw, hid_dim, n_layers):
    H = hid_dim
    Hp = -(-H // 128) * 128           # pad hidden to lane width

    def pad_gate_cols(wT):            # (In, 3H) -> (In, 3Hp), gate-aligned
        parts = [jnp.pad(wT[:, g * H:(g + 1) * H], ((0, 0), (0, Hp - H)))
                 for g in range(3)]
        return jnp.concatenate(parts, axis=1)

    layers = []
    for layer in range(n_layers):
        n_streams = 1 if layer == 0 else 2
        wih_streams = [[] for _ in range(n_streams)]
        whh_l, bfold_l, bhn_l = [], [], []
        for d in range(2):
            w_ih, w_hh, b_ih, b_hh = [a.astype(jnp.float32)
                                      for a in raw["gru"][layer][d]]
            wih_T = pad_gate_cols(w_ih.T)                    # (In, 3Hp)
            if layer == 0:
                wih_streams[0].append(wih_T.astype(jnp.bfloat16))
            else:
                # Split input rows [fwd H | bwd H] into two per-stream weights;
                # padded rows stay exactly zero (pad hidden cols never leak).
                w_f = jnp.pad(wih_T[0:H], ((0, Hp - H), (0, 0)))
                w_b = jnp.pad(wih_T[H:2 * H], ((0, Hp - H), (0, 0)))
                wih_streams[0].append(w_f.astype(jnp.bfloat16))
                wih_streams[1].append(w_b.astype(jnp.bfloat16))

            whh_T = pad_gate_cols(w_hh.T)                    # (H, 3Hp)
            whh_l.append(jnp.pad(whh_T, ((0, Hp - H), (0, 0)))
                         .astype(jnp.bfloat16))

            # Fold biases: gi gets b_ih (all gates) + b_hh for r,z gates.
            br = b_ih[0:H] + b_hh[0:H]
            bz = b_ih[H:2 * H] + b_hh[H:2 * H]
            bn = b_ih[2 * H:3 * H]
            bfold_l.append(jnp.concatenate(
                [jnp.pad(br, (0, Hp - H)), jnp.pad(bz, (0, Hp - H)),
                 jnp.pad(bn, (0, Hp - H))]).reshape(1, 3 * Hp))
            bhn_l.append(jnp.pad(b_hh[2 * H:3 * H], (0, Hp - H)).reshape(1, Hp))

        layers.append(dict(
            wih=tuple(jnp.stack(s) for s in wih_streams),    # tuple[(2,In_s,3Hp) bf16]
            whh=jnp.stack(whh_l),                            # (2, Hp, 3Hp) bf16
            bfold=jnp.stack(bfold_l),                        # (2, 1, 3Hp) f32
            bhn=jnp.stack(bhn_l)))                           # (2, 1, Hp)  f32
    return dict(embedding=raw["embedding"], layers=layers,
                hid_dim=H, hid_pad=Hp)


# ----------------------------------------------------------------------------
# Encoder forward (mirrors the PyTorch Encoder, batch_first=True).
# ----------------------------------------------------------------------------
def encoder_forward(prepared, tokens):
    """tokens: (B, T) int32 -> outputs (B, T, 2H), hidden (2*n_layers, B, H)."""
    H = prepared["hid_dim"]
    Hp = prepared["hid_pad"]

    emb = jnp.take(prepared["embedding"], tokens, axis=0)     # (B, T, E)
    # Dropout: identity (eval mode).  TODO(synk): training-mode dropout.
    B, T, E = emb.shape
    Bp = -(-B // 8) * 8                                       # pad batch to sublanes

    # One VMEM-budgeted time chunk shared by all layers; pad T to a multiple.
    t_chunk = _pick_t_chunk(T, Bp, max(E, 2 * Hp), Hp)
    T_pad = -(-T // t_chunk) * t_chunk

    x = jnp.transpose(emb, (1, 0, 2))                         # (T, B, E)
    x = jnp.pad(x, ((0, T_pad - T), (0, Bp - B), (0, 0)))     # (T_pad, Bp, E)
    streams = (x.reshape(T_pad * Bp, E).astype(jnp.bfloat16),)

    hiddens = []
    out_fwd = out_bwd = None
    for layer_p in prepared["layers"]:
        out = bigru_layer(streams, layer_p["wih"], layer_p["bfold"],
                          layer_p["whh"], layer_p["bhn"],
                          hid_pad=Hp, batch_pad=Bp,
                          t_chunk=t_chunk, t_real=T)          # (2, T_pad*Bp, Hp)
        out_fwd = out[0].reshape(T_pad, Bp, Hp)
        out_bwd = out[1].reshape(T_pad, Bp, Hp)
        # Last hidden derived from per-step outputs (fwd at t=T-1, bwd at t=0).
        hiddens.append(out_fwd[T - 1, :B, 0:H].astype(jnp.float32))
        hiddens.append(out_bwd[0, :B, 0:H].astype(jnp.float32))
        # Next layer consumes the two direction planes directly (no concat).
        streams = (out[0], out[1])
        # Inter-layer dropout: identity (eval mode).

    outputs = jnp.concatenate([out_fwd[:T, :B, 0:H], out_bwd[:T, :B, 0:H]],
                              axis=-1)
    outputs = jnp.transpose(outputs, (1, 0, 2)).astype(jnp.float32)  # (B, T, 2H)
    hidden = jnp.stack(hiddens, axis=0)                       # (2*n_layers, B, H)
    return outputs, hidden


# ----------------------------------------------------------------------------
# Pure-JAX reference (f32 scan) for a numerical sanity check.
# ----------------------------------------------------------------------------
def _gru_ref_dir(x_tbi, w_ih, w_hh, b_ih, b_hh, reverse):
    T, B, _ = x_tbi.shape
    H = w_hh.shape[1]
    xs = jnp.flip(x_tbi, axis=0) if reverse else x_tbi

    def step(h, x_t):
        gi = x_t @ w_ih.T + b_ih
        gh = h @ w_hh.T + b_hh
        r = jax.nn.sigmoid(gi[:, 0:H] + gh[:, 0:H])
        z = jax.nn.sigmoid(gi[:, H:2 * H] + gh[:, H:2 * H])
        n = jnp.tanh(gi[:, 2 * H:] + r * gh[:, 2 * H:])
        h_new = (1.0 - z) * n + z * h
        return h_new, h_new

    h0 = jnp.zeros((B, H), jnp.float32)
    h_last, ys = jax.lax.scan(step, h0, xs)
    if reverse:
        ys = jnp.flip(ys, axis=0)
    return ys, h_last


def encoder_reference(raw, tokens, hid_dim, n_layers):
    emb = jnp.take(raw["embedding"], tokens, axis=0)
    x = jnp.transpose(emb, (1, 0, 2))
    hiddens = []
    for layer in range(n_layers):
        of, hf = _gru_ref_dir(x, *raw["gru"][layer][0], reverse=False)
        ob, hb = _gru_ref_dir(x, *raw["gru"][layer][1], reverse=True)
        hiddens += [hf, hb]
        x = jnp.concatenate([of, ob], axis=-1)
    return jnp.transpose(x, (1, 0, 2)), jnp.stack(hiddens, axis=0)


if __name__ == "__main__":
    # Small, deterministic configuration.
    en_vocab_size = 50
    emb_dim = 16
    hid_dim = 32
    n_layers = 2
    batch = 2
    seq_len = 8

    key = jax.random.PRNGKey(0)
    k_params, k_tok1, k_tok2 = jax.random.split(key, 3)
    raw_params = init_encoder_params(k_params, en_vocab_size, emb_dim,
                                     hid_dim, n_layers)
    params = prepare_encoder_params(raw_params, hid_dim, n_layers)

    # --- Primary check: T divisible by the chosen chunk (no masking path). ---
    tokens = jax.random.randint(k_tok1, (batch, seq_len), 0,
                                en_vocab_size, dtype=jnp.int32)
    outputs, hidden = encoder_forward(params, tokens)
    outputs = jax.block_until_ready(outputs)
    hidden = jax.block_until_ready(hidden)

    assert outputs.shape == (batch, seq_len, 2 * hid_dim), outputs.shape
    assert hidden.shape == (2 * n_layers, batch, hid_dim), hidden.shape
    assert bool(jnp.all(jnp.isfinite(outputs))) and bool(jnp.all(jnp.isfinite(hidden)))

    ref_out, ref_hid = encoder_reference(raw_params, tokens, hid_dim, n_layers)
    assert float(jnp.max(jnp.abs(outputs - ref_out))) < 1e-1
    assert float(jnp.max(jnp.abs(hidden - ref_hid))) < 1e-1

    # --- Secondary check: T=7 (prime) exercises time padding, per-step mask
    #     and the multi-chunk grid — the fixed t_chunk-divisor path. ----------
    tokens7 = jax.random.randint(k_tok2, (batch, 7), 0,
                                 en_vocab_size, dtype=jnp.int32)
    out7, hid7 = encoder_forward(params, tokens7)
    out7 = jax.block_until_ready(out7)
    hid7 = jax.block_until_ready(hid7)
    ref_out7, ref_hid7 = encoder_reference(raw_params, tokens7, hid_dim, n_layers)
    assert out7.shape == (batch, 7, 2 * hid_dim)
    assert float(jnp.max(jnp.abs(out7 - ref_out7))) < 1e-1
    assert float(jnp.max(jnp.abs(hid7 - ref_hid7))) < 1e-1

    print("KERNEL_OK")
</pallas_src>

<mosaic_0001>
module attributes {stable_mosaic.version = 11 : i64} {
  func.func @_bigru_chunk_kernel(%arg0: i32, %arg1: i32, %arg2: memref<64x16xbf16, #tpu.memory_space<vmem>>, %arg3: memref<1x16x384xbf16, #tpu.memory_space<vmem>>, %arg4: memref<1x1x384xf32, #tpu.memory_space<vmem>>, %arg5: memref<1x128x384xbf16, #tpu.memory_space<vmem>>, %arg6: memref<1x1x128xf32, #tpu.memory_space<vmem>>, %arg7: memref<1x64x128xbf16, #tpu.memory_space<vmem>>, %arg8: memref<64x384xf32, #tpu.memory_space<vmem>>, %arg9: memref<8x128xf32, #tpu.memory_space<vmem>>) attributes {dimension_semantics = [#tpu.dimension_semantics<parallel>, #tpu.dimension_semantics<arbitrary>], iteration_bounds = array<i64: 2, 1>, scalar_prefetch = 0 : i64, scratch_operands = 2 : i64, tpu.core_type = #tpu.core_type<tc>, window_params = [{transform_indices = @transform_0, window_bounds = array<i64: 64, 16>}, {transform_indices = @transform_1, window_bounds = array<i64: 1, 16, 384>}, {transform_indices = @transform_2, window_bounds = array<i64: 1, 1, 384>}, {transform_indices = @transform_3, window_bounds = array<i64: 1, 128, 384>}, {transform_indices = @transform_4, window_bounds = array<i64: 1, 1, 128>}, {transform_indices = @transform_5, window_bounds = array<i64: 1, 64, 128>}]} {
    %c0_i32 = arith.constant 0 : i32
    %0 = arith.cmpi eq, %arg1, %c0_i32 : i32
    %1 = arith.extui %0 : i1 to i32
    %c0_i32_0 = arith.constant 0 : i32
    %2 = arith.cmpi ne, %1, %c0_i32_0 : i32
    scf.if %2 {
      %cst_93 = arith.constant 0.000000e+00 : f32
      %340 = vector.broadcast %cst_93 : f32 to vector<8x128xf32>
      %c0_94 = arith.constant 0 : index
      %c0_95 = arith.constant 0 : index
      %341 = vector.load %arg9[%c0_94, %c0_95] : memref<8x128xf32, #tpu.memory_space<vmem>>, vector<8x128xf32>
      tpu.vector_store %arg9[%c0_94, %c0_95], %340 {strides = array<i32>} : memref<8x128xf32, #tpu.memory_space<vmem>>, vector<8x128xf32>,
    } else {
    }
    %c0 = arith.constant 0 : index
    %c0_1 = arith.constant 0 : index
    %3 = vector.load %arg2[%c0, %c0_1] : memref<64x16xbf16, #tpu.memory_space<vmem>>, vector<64x16xbf16>
    %c0_2 = arith.constant 0 : index
    %c0_3 = arith.constant 0 : index
    %c0_4 = arith.constant 0 : index
    %4 = vector.load %arg3[%c0_2, %c0_3, %c0_4] : memref<1x16x384xbf16, #tpu.memory_space<vmem>>, vector<1x16x384xbf16>
    %5 = vector.shape_cast %4 : vector<1x16x384xbf16> to vector<16x384xbf16>
    %cst = arith.constant dense<0.000000e+00> : vector<64x384xf32>
    %6 = tpu.matmul %3, %5, %cst {dimension_numbers = #tpu.dot_dimension_numbers<[1], [0], [0], [1], [0, 0, 1, 1], [], []>} : vector<64x16xbf16>, vector<16x384xbf16>, vector<64x384xf32> -> vector<64x384xf32>
    %c0_5 = arith.constant 0 : index
    %c0_6 = arith.constant 0 : index
    %c0_7 = arith.constant 0 : index
    %7 = vector.load %arg4[%c0_5, %c0_6, %c0_7] : memref<1x1x384xf32, #tpu.memory_space<vmem>>, vector<1x1x384xf32>
    %8 = vector.shape_cast %7 : vector<1x1x384xf32> to vector<1x384xf32>
    %9 = vector.broadcast %8 : vector<1x384xf32> to vector<64x384xf32>
    %10 = arith.addf %6, %9 : vector<64x384xf32>
    %c0_8 = arith.constant 0 : index
    %c0_9 = arith.constant 0 : index
    %11 = vector.load %arg8[%c0_8, %c0_9] : memref<64x384xf32, #tpu.memory_space<vmem>>, vector<64x384xf32>
    tpu.vector_store %arg8[%c0_8, %c0_9], %10 {strides = array<i32>} : memref<64x384xf32, #tpu.memory_space<vmem>>, vector<64x384xf32>,
    %c0_10 = arith.constant 0 : index
    %c0_11 = arith.constant 0 : index
    %c0_12 = arith.constant 0 : index
    %12 = vector.load %arg5[%c0_10, %c0_11, %c0_12] : memref<1x128x384xbf16, #tpu.memory_space<vmem>>, vector<1x128x384xbf16>
    %13 = vector.shape_cast %12 : vector<1x128x384xbf16> to vector<128x384xbf16>
    %c0_13 = arith.constant 0 : index
    %c0_14 = arith.constant 0 : index
    %c0_15 = arith.constant 0 : index
    %14 = vector.load %arg6[%c0_13, %c0_14, %c0_15] : memref<1x1x128xf32, #tpu.memory_space<vmem>>, vector<1x1x128xf32>
    %15 = vector.shape_cast %14 : vector<1x1x128xf32> to vector<1x128xf32>
    %16 = vector.shape_cast %15 : vector<1x128xf32> to vector<1x128xf32>
    %17 = vector.broadcast %16 : vector<1x128xf32> to vector<8x128xf32>
    %c0_16 = arith.constant 0 : index
    %c0_17 = arith.constant 0 : index
    %18 = vector.load %arg9[%c0_16, %c0_17] : memref<8x128xf32, #tpu.memory_space<vmem>>, vector<8x128xf32>
    %c0_i32_18 = arith.constant 0 : i32
    %c2_i32 = arith.constant 2 : i32
    %19 = arith.muli %c2_i32, %c0_i32_18 : i32
    %c7_i32 = arith.constant 7 : i32
    %20 = arith.subi %c7_i32, %19 : i32
    %21 = arith.muli %arg0, %20 : i32
    %22 = arith.addi %c0_i32_18, %21 : i32
    %c8_i32 = arith.constant 8 : i32
    %23 = arith.muli %22, %c8_i32 : i32
    %24 = tpu.assume_multiple %23, 8 : i32
    %25 = arith.index_cast %24 : i32 to index
    %c0_19 = arith.constant 0 : index
    %26 = vector.load %arg8[%25, %c0_19] : memref<64x384xf32, #tpu.memory_space<vmem>>, vector<8x384xf32>
    %27 = arith.truncf %18 : vector<8x128xf32> to vector<8x128xbf16>
    %cst_20 = arith.constant dense<0.000000e+00> : vector<8x384xf32>
    %28 = tpu.matmul %27, %13, %cst_20 {dimension_numbers = #tpu.dot_dimension_numbers<[1], [0], [0], [1], [0, 0, 1, 1], [], []>} : vector<8x128xbf16>, vector<128x384xbf16>, vector<8x384xf32> -> vector<8x384xf32>
    %29 = vector.extract_strided_slice %26 {offsets = [0, 0], sizes = [8, 128], strides = [1, 1]} : vector<8x384xf32> to vector<8x128xf32>
    %30 = vector.extract_strided_slice %28 {offsets = [0, 0], sizes = [8, 128], strides = [1, 1]} : vector<8x384xf32> to vector<8x128xf32>
    %31 = arith.addf %29, %30 : vector<8x128xf32>
    %32 = arith.negf %31 : vector<8x128xf32>
    %33 = math.exp %32 : vector<8x128xf32>
    %cst_21 = arith.constant 1.000000e+00 : f32
    %34 = vector.broadcast %cst_21 : f32 to vector<8x128xf32>
    %35 = arith.addf %34, %33 : vector<8x128xf32>
    %36 = arith.divf %34, %35 : vector<8x128xf32>
    %37 = vector.extract_strided_slice %26 {offsets = [0, 128], sizes = [8, 128], strides = [1, 1]} : vector<8x384xf32> to vector<8x128xf32>
    %38 = vector.extract_strided_slice %28 {offsets = [0, 128], sizes = [8, 128], strides = [1, 1]} : vector<8x384xf32> to vector<8x128xf32>
    %39 = arith.addf %37, %38 : vector<8x128xf32>
    %40 = arith.negf %39 : vector<8x128xf32>
    %41 = math.exp %40 : vector<8x128xf32>
    %cst_22 = arith.constant 1.000000e+00 : f32
    %42 = vector.broadcast %cst_22 : f32 to vector<8x128xf32>
    %43 = arith.addf %42, %41 : vector<8x128xf32>
    %44 = arith.divf %42, %43 : vector<8x128xf32>
    %45 = vector.extract_strided_slice %26 {offsets = [0, 256], sizes = [8, 128], strides = [1, 1]} : vector<8x384xf32> to vector<8x128xf32>
    %46 = vector.extract_strided_slice %28 {offsets = [0, 256], sizes = [8, 128], strides = [1, 1]} : vector<8x384xf32> to vector<8x128xf32>
    %47 = arith.addf %46, %17 : vector<8x128xf32>
    %48 = arith.mulf %36, %47 : vector<8x128xf32>
    %49 = arith.addf %45, %48 : vector<8x128xf32>
    %50 = math.tanh %49 : vector<8x128xf32>
    %51 = arith.subf %18, %50 : vector<8x128xf32>
    %52 = arith.mulf %44, %51 : vector<8x128xf32>
    %53 = arith.addf %50, %52 : vector<8x128xf32>
    %54 = arith.truncf %53 : vector<8x128xf32> to vector<8x128xbf16>
    %c0_23 = arith.constant 0 : index
    %55 = arith.index_cast %24 : i32 to index
    %c0_24 = arith.constant 0 : index
    %56 = vector.load %arg7[%c0_23, %55, %c0_24] : memref<1x64x128xbf16, #tpu.memory_space<vmem>>, vector<1x8x128xbf16>
    %57 = vector.shape_cast %56 : vector<1x8x128xbf16> to vector<8x128xbf16>
    %58 = vector.shape_cast %54 : vector<8x128xbf16> to vector<1x8x128xbf16>
    tpu.vector_store %arg7[%c0_23, %55, %c0_24], %58 {strides = array<i32>} : memref<1x64x128xbf16, #tpu.memory_space<vmem>>, vector<1x8x128xbf16>,
    %c1_i32 = arith.constant 1 : i32
    %c2_i32_25 = arith.constant 2 : i32
    %59 = arith.muli %c2_i32_25, %c1_i32 : i32
    %c7_i32_26 = arith.constant 7 : i32
    %60 = arith.subi %c7_i32_26, %59 : i32
    %61 = arith.muli %arg0, %60 : i32
    %62 = arith.addi %c1_i32, %61 : i32
    %c8_i32_27 = arith.constant 8 : i32
    %63 = arith.muli %62, %c8_i32_27 : i32
    %64 = tpu.assume_multiple %63, 8 : i32
    %65 = arith.index_cast %64 : i32 to index
    %c0_28 = arith.constant 0 : index
    %66 = vector.load %arg8[%65, %c0_28] : memref<64x384xf32, #tpu.memory_space<vmem>>, vector<8x384xf32>
    %67 = arith.truncf %53 : vector<8x128xf32> to vector<8x128xbf16>
    %cst_29 = arith.constant dense<0.000000e+00> : vector<8x384xf32>
    %68 = tpu.matmul %67, %13, %cst_29 {dimension_numbers = #tpu.dot_dimension_numbers<[1], [0], [0], [1], [0, 0, 1, 1], [], []>} : vector<8x128xbf16>, vector<128x384xbf16>, vector<8x384xf32> -> vector<8x384xf32>
    %69 = vector.extract_strided_slice %66 {offsets = [0, 0], sizes = [8, 128], strides = [1, 1]} : vector<8x384xf32> to vector<8x128xf32>
    %70 = vector.extract_strided_slice %68 {offsets = [0, 0], sizes = [8, 128], strides = [1, 1]} : vector<8x384xf32> to vector<8x128xf32>
    %71 = arith.addf %69, %70 : vector<8x128xf32>
    %72 = arith.negf %71 : vector<8x128xf32>
    %73 = math.exp %72 : vector<8x128xf32>
    %cst_30 = arith.constant 1.000000e+00 : f32
    %74 = vector.broadcast %cst_30 : f32 to vector<8x128xf32>
    %75 = arith.addf %74, %73 : vector<8x128xf32>
    %76 = arith.divf %74, %75 : vector<8x128xf32>
    %77 = vector.extract_strided_slice %66 {offsets = [0, 128], sizes = [8, 128], strides = [1, 1]} : vector<8x384xf32> to vector<8x128xf32>
    %78 = vector.extract_strided_slice %68 {offsets = [0, 128], sizes = [8, 128], strides = [1, 1]} : vector<8x384xf32> to vector<8x128xf32>
    %79 = arith.addf %77, %78 : vector<8x128xf32>
    %80 = arith.negf %79 : vector<8x128xf32>
    %81 = math.exp %80 : vector<8x128xf32>
    %cst_31 = arith.constant 1.000000e+00 : f32
    %82 = vector.broadcast %cst_31 : f32 to vector<8x128xf32>
    %83 = arith.addf %82, %81 : vector<8x128xf32>
    %84 = arith.divf %82, %83 : vector<8x128xf32>
    %85 = vector.extract_strided_slice %66 {offsets = [0, 256], sizes = [8, 128], strides = [1, 1]} : vector<8x384xf32> to vector<8x128xf32>
    %86 = vector.extract_strided_slice %68 {offsets = [0, 256], sizes = [8, 128], strides = [1, 1]} : vector<8x384xf32> to vector<8x128xf32>
    %87 = arith.addf %86, %17 : vector<8x128xf32>
    %88 = arith.mulf %76, %87 : vector<8x128xf32>
    %89 = arith.addf %85, %88 : vector<8x128xf32>
    %90 = math.tanh %89 : vector<8x128xf32>
    %91 = arith.subf %53, %90 : vector<8x128xf32>
    %92 = arith.mulf %84, %91 : vector<8x128xf32>
    %93 = arith.addf %90, %92 : vector<8x128xf32>
    %94 = arith.truncf %93 : vector<8x128xf32> to vector<8x128xbf16>
    %c0_32 = arith.constant 0 : index
    %95 = arith.index_cast %64 : i32 to index
    %c0_33 = arith.constant 0 : index
    %96 = vector.load %arg7[%c0_32, %95, %c0_33] : memref<1x64x128xbf16, #tpu.memory_space<vmem>>, vector<1x8x128xbf16>
    %97 = vector.shape_cast %96 : vector<1x8x128xbf16> to vector<8x128xbf16>
    %98 = vector.shape_cast %94 : vector<8x128xbf16> to vector<1x8x128xbf16>
    tpu.vector_store %arg7[%c0_32, %95, %c0_33], %98 {strides = array<i32>} : memref<1x64x128xbf16, #tpu.memory_space<vmem>>, vector<1x8x128xbf16>,
    %c2_i32_34 = arith.constant 2 : i32
    %c2_i32_35 = arith.constant 2 : i32
    %99 = arith.muli %c2_i32_35, %c2_i32_34 : i32
    %c7_i32_36 = arith.constant 7 : i32
    %100 = arith.subi %c7_i32_36, %99 : i32
    %101 = arith.muli %arg0, %100 : i32
    %102 = arith.addi %c2_i32_34, %101 : i32
    %c8_i32_37 = arith.constant 8 : i32
    %103 = arith.muli %102, %c8_i32_37 : i32
    %104 = tpu.assume_multiple %103, 8 : i32
    %105 = arith.index_cast %104 : i32 to index
    %c0_38 = arith.constant 0 : index
    %106 = vector.load %arg8[%105, %c0_38] : memref<64x384xf32, #tpu.memory_space<vmem>>, vector<8x384xf32>
    %107 = arith.truncf %93 : vector<8x128xf32> to vector<8x128xbf16>
    %cst_39 = arith.constant dense<0.000000e+00> : vector<8x384xf32>
    %108 = tpu.matmul %107, %13, %cst_39 {dimension_numbers = #tpu.dot_dimension_numbers<[1], [0], [0], [1], [0, 0, 1, 1], [], []>} : vector<8x128xbf16>, vector<128x384xbf16>, vector<8x384xf32> -> vector<8x384xf32>
    %109 = vector.extract_strided_slice %106 {offsets = [0, 0], sizes = [8, 128], strides = [1, 1]} : vector<8x384xf32> to vector<8x128xf32>
    %110 = vector.extract_strided_slice %108 {offsets = [0, 0], sizes = [8, 128], strides = [1, 1]} : vector<8x384xf32> to vector<8x128xf32>
    %111 = arith.addf %109, %110 : vector<8x128xf32>
    %112 = arith.negf %111 : vector<8x128xf32>
    %113 = math.exp %112 : vector<8x128xf32>
    %cst_40 = arith.constant 1.000000e+00 : f32
    %114 = vector.broadcast %cst_40 : f32 to vector<8x128xf32>
    %115 = arith.addf %114, %113 : vector<8x128xf32>
    %116 = arith.divf %114, %115 : vector<8x128xf32>
    %117 = vector.extract_strided_slice %106 {offsets = [0, 128], sizes = [8, 128], strides = [1, 1]} : vector<8x384xf32> to vector<8x128xf32>
    %118 = vector.extract_strided_slice %108 {offsets = [0, 128], sizes = [8, 128], strides = [1, 1]} : vector<8x384xf32> to vector<8x128xf32>
    %119 = arith.addf %117, %118 : vector<8x128xf32>
    %120 = arith.negf %119 : vector<8x128xf32>
    %121 = math.exp %120 : vector<8x128xf32>
    %cst_41 = arith.constant 1.000000e+00 : f32
    %122 = vector.broadcast %cst_41 : f32 to vector<8x128xf32>
    %123 = arith.addf %122, %121 : vector<8x128xf32>
    %124 = arith.divf %122, %123 : vector<8x128xf32>
    %125 = vector.extract_strided_slice %106 {offsets = [0, 256], sizes = [8, 128], strides = [1, 1]} : vector<8x384xf32> to vector<8x128xf32>
    %126 = vector.extract_strided_slice %108 {offsets = [0, 256], sizes = [8, 128], strides = [1, 1]} : vector<8x384xf32> to vector<8x128xf32>
    %127 = arith.addf %126, %17 : vector<8x128xf32>
    %128 = arith.mulf %116, %127 : vector<8x128xf32>
    %129 = arith.addf %125, %128 : vector<8x128xf32>
    %130 = math.tanh %129 : vector<8x128xf32>
    %131 = arith.subf %93, %130 : vector<8x128xf32>
    %132 = arith.mulf %124, %131 : vector<8x128xf32>
    %133 = arith.addf %130, %132 : vector<8x128xf32>
    %134 = arith.truncf %133 : vector<8x128xf32> to vector<8x128xbf16>
    %c0_42 = arith.constant 0 : index
    %135 = arith.index_cast %104 : i32 to index
    %c0_43 = arith.constant 0 : index
    %136 = vector.load %arg7[%c0_42, %135, %c0_43] : memref<1x64x128xbf16, #tpu.memory_space<vmem>>, vector<1x8x128xbf16>
    %137 = vector.shape_cast %136 : vector<1x8x128xbf16> to vector<8x128xbf16>
    %138 = vector.shape_cast %134 : vector<8x128xbf16> to vector<1x8x128xbf16>
    tpu.vector_store %arg7[%c0_42, %135, %c0_43], %138 {strides = array<i32>} : memref<1x64x128xbf16, #tpu.memory_space<vmem>>, vector<1x8x128xbf16>,
    %c3_i32 = arith.constant 3 : i32
    %c2_i32_44 = arith.constant 2 : i32
    %139 = arith.muli %c2_i32_44, %c3_i32 : i32
    %c7_i32_45 = arith.constant 7 : i32
    %140 = arith.subi %c7_i32_45, %139 : i32
    %141 = arith.muli %arg0, %140 : i32
    %142 = arith.addi %c3_i32, %141 : i32
    %c8_i32_46 = arith.constant 8 : i32
    %143 = arith.muli %142, %c8_i32_46 : i32
    %144 = tpu.assume_multiple %143, 8 : i32
    %145 = arith.index_cast %144 : i32 to index
    %c0_47 = arith.constant 0 : index
    %146 = vector.load %arg8[%145, %c0_47] : memref<64x384xf32, #tpu.memory_space<vmem>>, vector<8x384xf32>
    %147 = arith.truncf %133 : vector<8x128xf32> to vector<8x128xbf16>
    %cst_48 = arith.constant dense<0.000000e+00> : vector<8x384xf32>
    %148 = tpu.matmul %147, %13, %cst_48 {dimension_numbers = #tpu.dot_dimension_numbers<[1], [0], [0], [1], [0, 0, 1, 1], [], []>} : vector<8x128xbf16>, vector<128x384xbf16>, vector<8x384xf32> -> vector<8x384xf32>
    %149 = vector.extract_strided_slice %146 {offsets = [0, 0], sizes = [8, 128], strides = [1, 1]} : vector<8x384xf32> to vector<8x128xf32>
    %150 = vector.extract_strided_slice %148 {offsets = [0, 0], sizes = [8, 128], strides = [1, 1]} : vector<8x384xf32> to vector<8x128xf32>
    %151 = arith.addf %149, %150 : vector<8x128xf32>
    %152 = arith.negf %151 : vector<8x128xf32>
    %153 = math.exp %152 : vector<8x128xf32>
    %cst_49 = arith.constant 1.000000e+00 : f32
    %154 = vector.broadcast %cst_49 : f32 to vector<8x128xf32>
    %155 = arith.addf %154, %153 : vector<8x128xf32>
    %156 = arith.divf %154, %155 : vector<8x128xf32>
    %157 = vector.extract_strided_slice %146 {offsets = [0, 128], sizes = [8, 128], strides = [1, 1]} : vector<8x384xf32> to vector<8x128xf32>
    %158 = vector.extract_strided_slice %148 {offsets = [0, 128], sizes = [8, 128], strides = [1, 1]} : vector<8x384xf32> to vector<8x128xf32>
    %159 = arith.addf %157, %158 : vector<8x128xf32>
    %160 = arith.negf %159 : vector<8x128xf32>
    %161 = math.exp %160 : vector<8x128xf32>
    %cst_50 = arith.constant 1.000000e+00 : f32
    %162 = vector.broadcast %cst_50 : f32 to vector<8x128xf32>
    %163 = arith.addf %162, %161 : vector<8x128xf32>
    %164 = arith.divf %162, %163 : vector<8x128xf32>
    %165 = vector.extract_strided_slice %146 {offsets = [0, 256], sizes = [8, 128], strides = [1, 1]} : vector<8x384xf32> to vector<8x128xf32>
    %166 = vector.extract_strided_slice %148 {offsets = [0, 256], sizes = [8, 128], strides = [1, 1]} : vector<8x384xf32> to vector<8x128xf32>
    %167 = arith.addf %166, %17 : vector<8x128xf32>
    %168 = arith.mulf %156, %167 : vector<8x128xf32>
    %169 = arith.addf %165, %168 : vector<8x128xf32>
    %170 = math.tanh %169 : vector<8x128xf32>
    %171 = arith.subf %133, %170 : vector<8x128xf32>
    %172 = arith.mulf %164, %171 : vector<8x128xf32>
    %173 = arith.addf %170, %172 : vector<8x128xf32>
    %174 = arith.truncf %173 : vector<8x128xf32> to vector<8x128xbf16>
    %c0_51 = arith.constant 0 : index
    %175 = arith.index_cast %144 : i32 to index
    %c0_52 = arith.constant 0 : index
    %176 = vector.load %arg7[%c0_51, %175, %c0_52] : memref<1x64x128xbf16, #tpu.memory_space<vmem>>, vector<1x8x128xbf16>
    %177 = vector.shape_cast %176 : vector<1x8x128xbf16> to vector<8x128xbf16>
    %178 = vector.shape_cast %174 : vector<8x128xbf16> to vector<1x8x128xbf16>
    tpu.vector_store %arg7[%c0_51, %175, %c0_52], %178 {strides = array<i32>} : memref<1x64x128xbf16, #tpu.memory_space<vmem>>, vector<1x8x128xbf16>,
    %c4_i32 = arith.constant 4 : i32
    %c2_i32_53 = arith.constant 2 : i32
    %179 = arith.muli %c2_i32_53, %c4_i32 : i32
    %c7_i32_54 = arith.constant 7 : i32
    %180 = arith.subi %c7_i32_54, %179 : i32
    %181 = arith.muli %arg0, %180 : i32
    %182 = arith.addi %c4_i32, %181 : i32
    %c8_i32_55 = arith.constant 8 : i32
    %183 = arith.muli %182, %c8_i32_55 : i32
    %184 = tpu.assume_multiple %183, 8 : i32
    %185 = arith.index_cast %184 : i32 to index
    %c0_56 = arith.constant 0 : index
    %186 = vector.load %arg8[%185, %c0_56] : memref<64x384xf32, #tpu.memory_space<vmem>>, vector<8x384xf32>
    %187 = arith.truncf %173 : vector<8x128xf32> to vector<8x128xbf16>
    %cst_57 = arith.constant dense<0.000000e+00> : vector<8x384xf32>
    %188 = tpu.matmul %187, %13, %cst_57 {dimension_numbers = #tpu.dot_dimension_numbers<[1], [0], [0], [1], [0, 0, 1, 1], [], []>} : vector<8x128xbf16>, vector<128x384xbf16>, vector<8x384xf32> -> vector<8x384xf32>
    %189 = vector.extract_strided_slice %186 {offsets = [0, 0], sizes = [8, 128], strides = [1, 1]} : vector<8x384xf32> to vector<8x128xf32>
    %190 = vector.extract_strided_slice %188 {offsets = [0, 0], sizes = [8, 128], strides = [1, 1]} : vector<8x384xf32> to vector<8x128xf32>
    %191 = arith.addf %189, %190 : vector<8x128xf32>
    %192 = arith.negf %191 : vector<8x128xf32>
    %193 = math.exp %192 : vector<8x128xf32>
    %cst_58 = arith.constant 1.000000e+00 : f32
    %194 = vector.broadcast %cst_58 : f32 to vector<8x128xf32>
    %195 = arith.addf %194, %193 : vector<8x128xf32>
    %196 = arith.divf %194, %195 : vector<8x128xf32>
    %197 = vector.extract_strided_slice %186 {offsets = [0, 128], sizes = [8, 128], strides = [1, 1]} : vector<8x384xf32> to vector<8x128xf32>
    %198 = vector.extract_strided_slice %188 {offsets = [0, 128], sizes = [8, 128], strides = [1, 1]} : vector<8x384xf32> to vector<8x128xf32>
    %199 = arith.addf %197, %198 : vector<8x128xf32>
    %200 = arith.negf %199 : vector<8x128xf32>
    %201 = math.exp %200 : vector<8x128xf32>
    %cst_59 = arith.constant 1.000000e+00 : f32
    %202 = vector.broadcast %cst_59 : f32 to vector<8x128xf32>
    %203 = arith.addf %202, %201 : vector<8x128xf32>
    %204 = arith.divf %202, %203 : vector<8x128xf32>
    %205 = vector.extract_strided_slice %186 {offsets = [0, 256], sizes = [8, 128], strides = [1, 1]} : vector<8x384xf32> to vector<8x128xf32>
    %206 = vector.extract_strided_slice %188 {offsets = [0, 256], sizes = [8, 128], strides = [1, 1]} : vector<8x384xf32> to vector<8x128xf32>
    %207 = arith.addf %206, %17 : vector<8x128xf32>
    %208 = arith.mulf %196, %207 : vector<8x128xf32>
    %209 = arith.addf %205, %208 : vector<8x128xf32>
    %210 = math.tanh %209 : vector<8x128xf32>
    %211 = arith.subf %173, %210 : vector<8x128xf32>
    %212 = arith.mulf %204, %211 : vector<8x128xf32>
    %213 = arith.addf %210, %212 : vector<8x128xf32>
    %214 = arith.truncf %213 : vector<8x128xf32> to vector<8x128xbf16>
    %c0_60 = arith.constant 0 : index
    %215 = arith.index_cast %184 : i32 to index
    %c0_61 = arith.constant 0 : index
    %216 = vector.load %arg7[%c0_60, %215, %c0_61] : memref<1x64x128xbf16, #tpu.memory_space<vmem>>, vector<1x8x128xbf16>
    %217 = vector.shape_cast %216 : vector<1x8x128xbf16> to vector<8x128xbf16>
    %218 = vector.shape_cast %214 : vector<8x128xbf16> to vector<1x8x128xbf16>
    tpu.vector_store %arg7[%c0_60, %215, %c0_61], %218 {strides = array<i32>} : memref<1x64x128xbf16, #tpu.memory_space<vmem>>, vector<1x8x128xbf16>,
    %c5_i32 = arith.constant 5 : i32
    %c2_i32_62 = arith.constant 2 : i32
    %219 = arith.muli %c2_i32_62, %c5_i32 : i32
    %c7_i32_63 = arith.constant 7 : i32
    %220 = arith.subi %c7_i32_63, %219 : i32
    %221 = arith.muli %arg0, %220 : i32
    %222 = arith.addi %c5_i32, %221 : i32
    %c8_i32_64 = arith.constant 8 : i32
    %223 = arith.muli %222, %c8_i32_64 : i32
    %224 = tpu.assume_multiple %223, 8 : i32
    %225 = arith.index_cast %224 : i32 to index
    %c0_65 = arith.constant 0 : index
    %226 = vector.load %arg8[%225, %c0_65] : memref<64x384xf32, #tpu.memory_space<vmem>>, vector<8x384xf32>
    %227 = arith.truncf %213 : vector<8x128xf32> to vector<8x128xbf16>
    %cst_66 = arith.constant dense<0.000000e+00> : vector<8x384xf32>
    %228 = tpu.matmul %227, %13, %cst_66 {dimension_numbers = #tpu.dot_dimension_numbers<[1], [0], [0], [1], [0, 0, 1, 1], [], []>} : vector<8x128xbf16>, vector<128x384xbf16>, vector<8x384xf32> -> vector<8x384xf32>
    %229 = vector.extract_strided_slice %226 {offsets = [0, 0], sizes = [8, 128], strides = [1, 1]} : vector<8x384xf32> to vector<8x128xf32>
    %230 = vector.extract_strided_slice %228 {offsets = [0, 0], sizes = [8, 128], strides = [1, 1]} : vector<8x384xf32> to vector<8x128xf32>
    %231 = arith.addf %229, %230 : vector<8x128xf32>
    %232 = arith.negf %231 : vector<8x128xf32>
    %233 = math.exp %232 : vector<8x128xf32>
    %cst_67 = arith.constant 1.000000e+00 : f32
    %234 = vector.broadcast %cst_67 : f32 to vector<8x128xf32>
    %235 = arith.addf %234, %233 : vector<8x128xf32>
    %236 = arith.divf %234, %235 : vector<8x128xf32>
    %237 = vector.extract_strided_slice %226 {offsets = [0, 128], sizes = [8, 128], strides = [1, 1]} : vector<8x384xf32> to vector<8x128xf32>
    %238 = vector.extract_strided_slice %228 {offsets = [0, 128], sizes = [8, 128], strides = [1, 1]} : vector<8x384xf32> to vector<8x128xf32>
    %239 = arith.addf %237, %238 : vector<8x128xf32>
    %240 = arith.negf %239 : vector<8x128xf32>
    %241 = math.exp %240 : vector<8x128xf32>
    %cst_68 = arith.constant 1.000000e+00 : f32
    %242 = vector.broadcast %cst_68 : f32 to vector<8x128xf32>
    %243 = arith.addf %242, %241 : vector<8x128xf32>
    %244 = arith.divf %242, %243 : vector<8x128xf32>
    %245 = vector.extract_strided_slice %226 {offsets = [0, 256], sizes = [8, 128], strides = [1, 1]} : vector<8x384xf32> to vector<8x128xf32>
    %246 = vector.extract_strided_slice %228 {offsets = [0, 256], sizes = [8, 128], strides = [1, 1]} : vector<8x384xf32> to vector<8x128xf32>
    %247 = arith.addf %246, %17 : vector<8x128xf32>
    %248 = arith.mulf %236, %247 : vector<8x128xf32>
    %249 = arith.addf %245, %248 : vector<8x128xf32>
    %250 = math.tanh %249 : vector<8x128xf32>
    %251 = arith.subf %213, %250 : vector<8x128xf32>
    %252 = arith.mulf %244, %251 : vector<8x128xf32>
    %253 = arith.addf %250, %252 : vector<8x128xf32>
    %254 = arith.truncf %253 : vector<8x128xf32> to vector<8x128xbf16>
    %c0_69 = arith.constant 0 : index
    %255 = arith.index_cast %224 : i32 to index
    %c0_70 = arith.constant 0 : index
    %256 = vector.load %arg7[%c0_69, %255, %c0_70] : memref<1x64x128xbf16, #tpu.memory_space<vmem>>, vector<1x8x128xbf16>
    %257 = vector.shape_cast %256 : vector<1x8x128xbf16> to vector<8x128xbf16>
    %258 = vector.shape_cast %254 : vector<8x128xbf16> to vector<1x8x128xbf16>
    tpu.vector_store %arg7[%c0_69, %255, %c0_70], %258 {strides = array<i32>} : memref<1x64x128xbf16, #tpu.memory_space<vmem>>, vector<1x8x128xbf16>,
    %c6_i32 = arith.constant 6 : i32
    %c2_i32_71 = arith.constant 2 : i32
    %259 = arith.muli %c2_i32_71, %c6_i32 : i32
    %c7_i32_72 = arith.constant 7 : i32
    %260 = arith.subi %c7_i32_72, %259 : i32
    %261 = arith.muli %arg0, %260 : i32
    %262 = arith.addi %c6_i32, %261 : i32
    %c8_i32_73 = arith.constant 8 : i32
    %263 = arith.muli %262, %c8_i32_73 : i32
    %264 = tpu.assume_multiple %263, 8 : i32
    %265 = arith.index_cast %264 : i32 to index
    %c0_74 = arith.constant 0 : index
    %266 = vector.load %arg8[%265, %c0_74] : memref<64x384xf32, #tpu.memory_space<vmem>>, vector<8x384xf32>
    %267 = arith.truncf %253 : vector<8x128xf32> to vector<8x128xbf16>
    %cst_75 = arith.constant dense<0.000000e+00> : vector<8x384xf32>
    %268 = tpu.matmul %267, %13, %cst_75 {dimension_numbers = #tpu.dot_dimension_numbers<[1], [0], [0], [1], [0, 0, 1, 1], [], []>} : vector<8x128xbf16>, vector<128x384xbf16>, vector<8x384xf32> -> vector<8x384xf32>
    %269 = vector.extract_strided_slice %266 {offsets = [0, 0], sizes = [8, 128], strides = [1, 1]} : vector<8x384xf32> to vector<8x128xf32>
    %270 = vector.extract_strided_slice %268 {offsets = [0, 0], sizes = [8, 128], strides = [1, 1]} : vector<8x384xf32> to vector<8x128xf32>
    %271 = arith.addf %269, %270 : vector<8x128xf32>
    %272 = arith.negf %271 : vector<8x128xf32>
    %273 = math.exp %272 : vector<8x128xf32>
    %cst_76 = arith.constant 1.000000e+00 : f32
    %274 = vector.broadcast %cst_76 : f32 to vector<8x128xf32>
    %275 = arith.addf %274, %273 : vector<8x128xf32>
    %276 = arith.divf %274, %275 : vector<8x128xf32>
    %277 = vector.extract_strided_slice %266 {offsets = [0, 128], sizes = [8, 128], strides = [1, 1]} : vector<8x384xf32> to vector<8x128xf32>
    %278 = vector.extract_strided_slice %268 {offsets = [0, 128], sizes = [8, 128], strides = [1, 1]} : vector<8x384xf32> to vector<8x128xf32>
    %279 = arith.addf %277, %278 : vector<8x128xf32>
    %280 = arith.negf %279 : vector<8x128xf32>
    %281 = math.exp %280 : vector<8x128xf32>
    %cst_77 = arith.constant 1.000000e+00 : f32
    %282 = vector.broadcast %cst_77 : f32 to vector<8x128xf32>
    %283 = arith.addf %282, %281 : vector<8x128xf32>
    %284 = arith.divf %282, %283 : vector<8x128xf32>
    %285 = vector.extract_strided_slice %266 {offsets = [0, 256], sizes = [8, 128], strides = [1, 1]} : vector<8x384xf32> to vector<8x128xf32>
    %286 = vector.extract_strided_slice %268 {offsets = [0, 256], sizes = [8, 128], strides = [1, 1]} : vector<8x384xf32> to vector<8x128xf32>
    %287 = arith.addf %286, %17 : vector<8x128xf32>
    %288 = arith.mulf %276, %287 : vector<8x128xf32>
    %289 = arith.addf %285, %288 : vector<8x128xf32>
    %290 = math.tanh %289 : vector<8x128xf32>
    %291 = arith.subf %253, %290 : vector<8x128xf32>
    %292 = arith.mulf %284, %291 : vector<8x128xf32>
    %293 = arith.addf %290, %292 : vector<8x128xf32>
    %294 = arith.truncf %293 : vector<8x128xf32> to vector<8x128xbf16>
    %c0_78 = arith.constant 0 : index
    %295 = arith.index_cast %264 : i32 to index
    %c0_79 = arith.constant 0 : index
    %296 = vector.load %arg7[%c0_78, %295, %c0_79] : memref<1x64x128xbf16, #tpu.memory_space<vmem>>, vector<1x8x128xbf16>
    %297 = vector.shape_cast %296 : vector<1x8x128xbf16> to vector<8x128xbf16>
    %298 = vector.shape_cast %294 : vector<8x128xbf16> to vector<1x8x128xbf16>
    tpu.vector_store %arg7[%c0_78, %295, %c0_79], %298 {strides = array<i32>} : memref<1x64x128xbf16, #tpu.memory_space<vmem>>, vector<1x8x128xbf16>,
    %c7_i32_80 = arith.constant 7 : i32
    %c2_i32_81 = arith.constant 2 : i32
    %299 = arith.muli %c2_i32_81, %c7_i32_80 : i32
    %c7_i32_82 = arith.constant 7 : i32
    %300 = arith.subi %c7_i32_82, %299 : i32
    %301 = arith.muli %arg0, %300 : i32
    %302 = arith.addi %c7_i32_80, %301 : i32
    %c8_i32_83 = arith.constant 8 : i32
    %303 = arith.muli %302, %c8_i32_83 : i32
    %304 = tpu.assume_multiple %303, 8 : i32
    %305 = arith.index_cast %304 : i32 to index
    %c0_84 = arith.constant 0 : index
    %306 = vector.load %arg8[%305, %c0_84] : memref<64x384xf32, #tpu.memory_space<vmem>>, vector<8x384xf32>
    %307 = arith.truncf %293 : vector<8x128xf32> to vector<8x128xbf16>
    %cst_85 = arith.constant dense<0.000000e+00> : vector<8x384xf32>
    %308 = tpu.matmul %307, %13, %cst_85 {dimension_numbers = #tpu.dot_dimension_numbers<[1], [0], [0], [1], [0, 0, 1, 1], [], []>} : vector<8x128xbf16>, vector<128x384xbf16>, vector<8x384xf32> -> vector<8x384xf32>
    %309 = vector.extract_strided_slice %306 {offsets = [0, 0], sizes = [8, 128], strides = [1, 1]} : vector<8x384xf32> to vector<8x128xf32>
    %310 = vector.extract_strided_slice %308 {offsets = [0, 0], sizes = [8, 128], strides = [1, 1]} : vector<8x384xf32> to vector<8x128xf32>
    %311 = arith.addf %309, %310 : vector<8x128xf32>
    %312 = arith.negf %311 : vector<8x128xf32>
    %313 = math.exp %312 : vector<8x128xf32>
    %cst_86 = arith.constant 1.000000e+00 : f32
    %314 = vector.broadcast %cst_86 : f32 to vector<8x128xf32>
    %315 = arith.addf %314, %313 : vector<8x128xf32>
    %316 = arith.divf %314, %315 : vector<8x128xf32>
    %317 = vector.extract_strided_slice %306 {offsets = [0, 128], sizes = [8, 128], strides = [1, 1]} : vector<8x384xf32> to vector<8x128xf32>
    %318 = vector.extract_strided_slice %308 {offsets = [0, 128], sizes = [8, 128], strides = [1, 1]} : vector<8x384xf32> to vector<8x128xf32>
    %319 = arith.addf %317, %318 : vector<8x128xf32>
    %320 = arith.negf %319 : vector<8x128xf32>
    %321 = math.exp %320 : vector<8x128xf32>
    %cst_87 = arith.constant 1.000000e+00 : f32
    %322 = vector.broadcast %cst_87 : f32 to vector<8x128xf32>
    %323 = arith.addf %322, %321 : vector<8x128xf32>
    %324 = arith.divf %322, %323 : vector<8x128xf32>
    %325 = vector.extract_strided_slice %306 {offsets = [0, 256], sizes = [8, 128], strides = [1, 1]} : vector<8x384xf32> to vector<8x128xf32>
    %326 = vector.extract_strided_slice %308 {offsets = [0, 256], sizes = [8, 128], strides = [1, 1]} : vector<8x384xf32> to vector<8x128xf32>
    %327 = arith.addf %326, %17 : vector<8x128xf32>
    %328 = arith.mulf %316, %327 : vector<8x128xf32>
    %329 = arith.addf %325, %328 : vector<8x128xf32>
    %330 = math.tanh %329 : vector<8x128xf32>
    %331 = arith.subf %293, %330 : vector<8x128xf32>
    %332 = arith.mulf %324, %331 : vector<8x128xf32>
    %333 = arith.addf %330, %332 : vector<8x128xf32>
    %334 = arith.truncf %333 : vector<8x128xf32> to vector<8x128xbf16>
    %c0_88 = arith.constant 0 : index
    %335 = arith.index_cast %304 : i32 to index
    %c0_89 = arith.constant 0 : index
    %336 = vector.load %arg7[%c0_88, %335, %c0_89] : memref<1x64x128xbf16, #tpu.memory_space<vmem>>, vector<1x8x128xbf16>
    %337 = vector.shape_cast %336 : vector<1x8x128xbf16> to vector<8x128xbf16>
    %338 = vector.shape_cast %334 : vector<8x128xbf16> to vector<1x8x128xbf16>
    tpu.vector_store %arg7[%c0_88, %335, %c0_89], %338 {strides = array<i32>} : memref<1x64x128xbf16, #tpu.memory_space<vmem>>, vector<1x8x128xbf16>,
    %c8_i32_90 = arith.constant 8 : i32
    %c0_91 = arith.constant 0 : index
    %c0_92 = arith.constant 0 : index
    %339 = vector.load %arg9[%c0_91, %c0_92] : memref<8x128xf32, #tpu.memory_space<vmem>>, vector<8x128xf32>
    tpu.vector_store %arg9[%c0_91, %c0_92], %333 {strides = array<i32>} : memref<8x128xf32, #tpu.memory_space<vmem>>, vector<8x128xf32>,
    return
  }
  func.func @transform_0(%arg0: i32, %arg1: i32) -> (i32, i32) {
    %c2_i32 = arith.constant 2 : i32
    %0 = arith.muli %c2_i32, %arg1 : i32
    %c0_i32 = arith.constant 0 : i32
    %1 = arith.subi %c0_i32, %0 : i32
    %2 = arith.muli %arg0, %1 : i32
    %3 = arith.addi %arg1, %2 : i32
    %c0_i32_0 = arith.constant 0 : i32
    %c0_i32_1 = arith.constant 0 : i32
    return %3, %c0_i32_0 : i32, i32
  }
  func.func @transform_1(%arg0: i32, %arg1: i32) -> (i32, i32, i32) {
    %c0_i32 = arith.constant 0 : i32
    %c0_i32_0 = arith.constant 0 : i32
    %c0_i32_1 = arith.constant 0 : i32
    return %arg0, %c0_i32, %c0_i32_0 : i32, i32, i32
  }
  func.func @transform_2(%arg0: i32, %arg1: i32) -> (i32, i32, i32) {
    %c0_i32 = arith.constant 0 : i32
    %c0_i32_0 = arith.constant 0 : i32
    %c0_i32_1 = arith.constant 0 : i32
    return %arg0, %c0_i32, %c0_i32_0 : i32, i32, i32
  }
  func.func @transform_3(%arg0: i32, %arg1: i32) -> (i32, i32, i32) {
    %c0_i32 = arith.constant 0 : i32
    %c0_i32_0 = arith.constant 0 : i32
    %c0_i32_1 = arith.constant 0 : i32
    return %arg0, %c0_i32, %c0_i32_0 : i32, i32, i32
  }
  func.func @transform_4(%arg0: i32, %arg1: i32) -> (i32, i32, i32) {
    %c0_i32 = arith.constant 0 : i32
    %c0_i32_0 = arith.constant 0 : i32
    %c0_i32_1 = arith.constant 0 : i32
    return %arg0, %c0_i32, %c0_i32_0 : i32, i32, i32
  }
  func.func @transform_5(%arg0: i32, %arg1: i32) -> (i32, i32, i32) {
    %c2_i32 = arith.constant 2 : i32
    %0 = arith.muli %c2_i32, %arg1 : i32
    %c0_i32 = arith.constant 0 : i32
    %1 = arith.subi %c0_i32, %0 : i32
    %2 = arith.muli %arg0, %1 : i32
    %3 = arith.addi %arg1, %2 : i32
    %c0_i32_0 = arith.constant 0 : i32
    %c0_i32_1 = arith.constant 0 : i32
    return %arg0, %3, %c0_i32_0 : i32, i32, i32
  }
}

</mosaic_0001>

<bundles_post_ra>
// kernel: tpu_custom_call.1
= control target key start
LH: loop header
LB: loop body
LE: loop exit
PB: predicated region body
PF: predicated region fallthrough
CT: control target
= control target key end

     0   :  { %s3540_s0 = inlined_call_operand.vmem [shape: bf16[64,16], index: 0, kind: input, shape index: {}]   ;;  %s3541_s1 = inlined_call_operand.hbm [shape: bf16[2,16,384], index: 1, kind: input, shape index: {}]   ;;  %s3542_s2 = inlined_call_operand.vmem [shape: f32[2,1,384], index: 2, kind: input, shape index: {}]   ;;  %s3543_s3 = inlined_call_operand.hbm [shape: bf16[2,128,384], index: 3, kind: input, shape index: {}]   ;;  %s3544_s4 = inlined_call_operand.vmem [shape: f32[2,1,128], index: 4, kind: input, shape index: {}]   ;;  %s3545_s5 = inlined_call_operand.hbm [shape: bf16[2,64,128], index: 5, kind: output, shape index: {}]  }
   0x1   :  { %3549 = sst [smem:[#allocation13_spill]] %s3541_s1 }
   0x2   :  { %10 = vsyncpa [#allocation5], 0 }
   0x3   :  { %12 = vsyncpa [#allocation5 + $0x1], 0 }
   0x4   :  { %13 = vsyncpa [#allocation8], 0 }
   0x5   :  { %15 = vsyncpa [#allocation8 + $0x1], 0 }
   0x6   :  { %16 = vsyncpa [#allocation6], 0 }
   0x7   :  { %18 = vsyncpa [#allocation6 + $0x1], 0  ;;  %s2714_s18 = smov 0   ;;  %s2716_s19 = smov 0  }
   0x8   :  { %s2718_s20 = smov 0   ;;  %s2720_s21 = smov 0  }
   0x9   :  { %s2722_s22 = smov 0   ;;  %s2724_s23 = smov 0  }
   0xa LB: > { %s1932_s24 = sadd.s32 4294967295, %s2671_s23   ;;  %s1933_s25 = sadd.s32 4294967294, %s2671_s23   ;;  %s2671_s23 = sphi %s2724_s23, %s24_s23   ;;  %s2667_s22 = sphi %s2722_s22, %s3567_s22   ;;  %s2663_s21 = sphi %s2720_s21, %s3566_s21   ;;  %s2659_s20 = sphi %s2718_s20, %s3565_s20   ;;  %s2655_s19 = sphi %s2716_s19, %s3564_s19   ;;  %s2651_s18 = sphi %s2714_s18, %s3563_s18  }
   0xb   : > { %s36_s26 = sadd.s32 1, %s2667_s22  ;;  %s77_s27 = sadd.s32 1, %s2659_s20 }
   0xc   : > { %p38_p0 = scmp.ge.s32.totalorder %s36_s26, 2  ;;  %p84_p1 = scmp.ne.s32.totalorder %s2659_s20, %s2655_s19 }
   0xd   : > { %p85_p2 = scmp.eq.s32.totalorder %s2671_s23, 0  ;;  %p90_p3 = scmp.ne.s32.totalorder %s2655_s19, %s2651_s18 }
   0xe   : > { %s3569_s26 = smov (%p38_p0, %s36_s26), 0  ;;  %p91_p5 = scmp.eq.s32.totalorder %s1932_s24, 0 }
   0xf   : > { %p2755_p4 = por %p85_p2, %p84_p1  ;;  %s74_s29 = ssub.s32 %s2667_s22, %s3569_s26 }
  0x10   : > { %p202_p6 = scmp.eq.s32.totalorder %s1932_s24, 1  ;;  %p75_p7 = scmp.eq.s32.totalorder %s74_s29, 0 }
  0x11   : > { %p2761_p8 = por %p91_p5, %p90_p3  ;;  %p208_p10 = scmp.eq.s32.totalorder %s1933_s25, 1 }
  0x12   : > { %p2765_p9 = por %p202_p6, %p84_p1  ;;  %p2322_p13 = scmp.lt.s32.totalorder %s2671_s23, 2 }
  0x13   : > { %s3551_s30 = scalar_select %p2761_p8, 1, 0 }
  0x14   : > { %s3552_s6 = scalar_select %p2765_p9, 1, 0 }
  0x15   : > { %s2770_s7 = scalar_select %p75_p7, %s2659_s20, %s77_s27  }
  0x16   : > { %p2772_p11 = por %p208_p10, %p90_p3  ;;  %s2779_s9 = sand.u32 1, %s2659_s20  }
  0x17   : > { %s2298_s10 = smul.u32 24, %s2779_s9  ;;  %p2785_p0 = pnand %p2322_p13, %p2755_p4 }
  0x18   : > { %s3553_s8 = scalar_select %p2772_p11, 1, 0 }
  0x19   : > { %s2299_s11 = smul.u32 384, %s2667_s22  ;;  %s3555_s1 = sld [smem:[#allocation13_spill]] }
  0x1a   : > { %s249_s16 = scalar_lea.vmem [#allocation4], %s2298_s10  ;;  %s246_s24 = scalar_lea.sflag [#allocation5], %s2779_s9 }
  0x1b   : > { %s256_s17 = sshll.u32 %s249_s16, 4  ;;  %p2527_p3 = pneg %p2785_p0  ;;  %s2794_s17 = int_to_ptr.vmem [resolvable:$true] %s256_s17 }
  0x1f   : > { %s2792_s15 = scalar_lea.hbm %s3555_s1, %s2299_s11  ;;  %s2530_s29 = scalar_lea.hbm %s3555_s1, 768 }
  0x20   : > { %s2525_s25 = scalar_lea.hbm %s2792_s15, 384  ;;  %p2531_p6 = scmp.lt.u32.totalorder %s2792_s15, %s3555_s1 }
  0x21   : > { %p2526_p2 = scmp.ne.s32.totalorder %s2792_s15, %s2525_s25  ;;  %p2532_p7 = scmp.lt.u32.totalorder %s2530_s29, %s2525_s25 }
  0x22   : > { %p2534_p13 = scmp.lt.u32.totalorder %s2525_s25, %s2792_s15 }
  0x23   : > { %p2528_p4 = pnand %p2527_p3, %p2526_p2  ;;  %p2533_p10 = por %p2532_p7, %p2531_p6 }
  0x25   : > { %p2529_p5 = pneg %p2528_p4  ;;  %p2535_p12 = por %p2534_p13, %p2533_p10 }
  0x27   : > { %p2536_p1 = pnand %p2535_p12, %p2529_p5 }
  0x29   : > { %2539 = shalt.err (!%p2536_p1)
}
  0x2a   : > { %s2540_s10 = scalar_lea.vmem %s2794_s17, 384  ;;  %s2673_s14 = smov [#allocation4]  }
  0x2b   : > { %p2541_p2 = scmp.ne.s32.totalorder %s2794_s17, %s2540_s10  ;;  %s2545_s16 = sshll.u32 %s2673_s14, 4  ;;  %s2546_s16 = int_to_ptr.vmem [resolvable:$false] %s2545_s16 }
  0x2c   : > { %s2547_s27 = scalar_lea.vmem %s2546_s16, 768  ;;  %p2548_p9 = scmp.lt.s32.totalorder %s2794_s17, %s2546_s16 }
  0x2d   : > { %p2543_p4 = pnand %p2541_p2, %p2527_p3  ;;  %p2549_p6 = scmp.lt.s32.totalorder %s2547_s27, %s2540_s10 }
  0x2f   : > { %p2544_p11 = pneg %p2543_p4  ;;  %p2550_p7 = por %p2549_p6, %p2548_p9 }
  0x31   : > { %p2551_p10 = pnand %p2550_p7, %p2544_p11 }
  0x33   : > { %2554 = shalt.err (!%p2551_p10)
}
  0x34   : > { %s3547_s25 = smov 192   ;;  %s2675_s28 = smov 12  }
  0x35   : > { %2314 = dma.hbm_to_vmem [thread:$0]  (!%p2785_p0), %s2792_s15, 384, %s2794_s17, %s246_s24, %s3547_s25, %s3547_s25, %s2675_s28  }
  0x36   : > { %p298_p9 = scmp.lt.s32.totalorder %s2671_s23, 3  ;;  %s2300_s29 = smul.u32 192, %s2779_s9 }
  0x37   : > { %p3556_p11 = scmp.ge.s32.totalorder %s2671_s23, 1  ;;  %s2301_s13 = smul.u32 3072, %s2667_s22 }
  0x38   : > { %s277_s27 = scalar_lea.vmem [#allocation7], %s2300_s29  ;;  %s274_s15 = scalar_lea.sflag [#allocation8], %s2779_s9 }
  0x39   : > { %p2832_p12 = pnand %p3556_p11, %p298_p9  ;;  %s2840_s16 = scalar_lea.hbm %s3543_s3, %s2301_s13 }
  0x3a   : > { %s284_s1 = sshll.u32 %s277_s27, 4  ;;  %s2555_s17 = scalar_lea.hbm %s2840_s16, 3072  ;;  %s2842_s1 = int_to_ptr.vmem [resolvable:$true] %s284_s1 }
  0x3b   : > { %p2556_p1 = scmp.ne.s32.totalorder %s2840_s16, %s2555_s17  ;;  %s2560_s13 = scalar_lea.hbm %s3543_s3, 6144 }
  0x3c   : > { %p2561_p2 = scmp.lt.u32.totalorder %s2840_s16, %s3543_s3  ;;  %p2562_p4 = scmp.lt.u32.totalorder %s2560_s13, %s2555_s17 }
  0x3d   : > { %p2558_p5 = pnand %p2556_p1, %p2527_p3  ;;  %p2564_p7 = scmp.lt.u32.totalorder %s2555_s17, %s2840_s16 }
  0x3e   : > { %p2563_p6 = por %p2562_p4, %p2561_p2 }
  0x3f   : > { %p2559_p13 = pneg %p2558_p5 }
  0x40   : > { %p2565_p10 = por %p2564_p7, %p2563_p6 }
  0x42   : > { %p2566_p9 = pnand %p2565_p10, %p2559_p13 }
  0x44   : > { %2569 = shalt.err (!%p2566_p9)
}
  0x45   : > { %s2570_s29 = scalar_lea.vmem %s2842_s1, 3072  ;;  %s2676_s25 = smov [#allocation7]  }
  0x46   : > { %p2571_p11 = scmp.ne.s32.totalorder %s2842_s1, %s2570_s29  ;;  %s2575_s27 = sshll.u32 %s2676_s25, 4  ;;  %s2576_s27 = int_to_ptr.vmem [resolvable:$false] %s2575_s27 }
  0x47   : > { %s2577_s24 = scalar_lea.vmem %s2576_s27, 6144  ;;  %p2578_p8 = scmp.lt.s32.totalorder %s2842_s1, %s2576_s27 }
  0x48   : > { %p2573_p1 = pnand %p2571_p11, %p2527_p3  ;;  %p2579_p2 = scmp.lt.s32.totalorder %s2577_s24, %s2570_s29 }
  0x4a   : > { %p2574_p5 = pneg %p2573_p1  ;;  %p2580_p4 = por %p2579_p2, %p2578_p8 }
  0x4c   : > { %p2581_p6 = pnand %p2580_p4, %p2574_p5 }
  0x4e   : > { %2584 = shalt.err (!%p2581_p6)
}
  0x4f   : > { %s3558_s17 = smov 192   ;;  %302 = sbr.rel (%p2832_p12) target bundleno = 2252 (0x8cc), region = 40 }
  0x50   : > { %2317 = dma.hbm_to_vmem [thread:$0]  (!%p2785_p0), %s2840_s16, 3072, %s2842_s1, %s274_s15, %s3558_s17, %s3558_s17, %s2675_s28  }
  0x51   : > { %s2876_s13 = sand.u32 (!%p2832_p12), 1, %s2655_s19   ;;  %p3559_p8 = scmp.ne.s32.totalorder (!%p2832_p12), %s3551_s30, 0 }
  0x52   : > { %s2302_s10 = smul.u32 (!%p2832_p12), 24, %s2876_s13  ;;  %s305_s14 = scalar_lea.sflag (!%p2832_p12), [#allocation5], %s2876_s13 }
  0x54   : > { %s308_s12 = scalar_lea.vmem (!%p2832_p12), [#allocation4], %s2302_s10 }
  0x56   : > { %2638 = dma.done.wait (%p3559_p8), %s305_s14, 384  }
  0x57   : > { %2640 = vsyncadd (%p3559_p8), %s305_s14, 4294966912  ;;  %s2303_s1 = smul.u32 192, %s2876_s13  ;;  %s314_s9 = scalar_lea.sflag [#allocation8], %s2876_s13 }
  0x59   : > { %s2886_s28 = scalar_lea.vmem [#allocation7], %s2303_s1 }
  0x5a   : > { %2642 = dma.done.wait (%p3559_p8), %s314_s9, 3072  }
  0x5b   : > { %2644 = vsyncadd (%p3559_p8), %s314_s9, 4294964224  ;;  %v2677_v0 = vmov 0   ;;  %v2380_v1 = vld [vmem:[%s308_s12 + $0x4] ss:$12 sps:$4 sm:$0xff]   ;;  %v2382_v2 = vld [vmem:[%s308_s12] ss:$12 sps:$4 sm:$0xff]   ;;  %v411_v34 = vlaneseq }
  0x5c   : > { %507 = vmatprep.mubr.bf16.mxu0 %v2677_v0  ;;  %475 = vmatprep.subr.bf16.mxu0 %v2380_v1  ;;  %v2383_v3 = vld [vmem:[%s3540_s0] sm:$0xff]   ;;  %vm462_vm0 = vcmask 130048   ;;  %v2900_v5 = vld [vmem:[%s2886_s28] ss:$12 sps:$4 sm:$0xff]   ;;  %v2903_v6 = vld [vmem:[%s2886_s28 + $0x1c] ss:$12 sps:$4 sm:$0xff]  }
  0x5d   : > { %476 = vmatpush1.bf16.msra.mxu0 %v2382_v2  ;;  %v2897_v4 = vld [vmem:[%s2886_s28 + $0x4] ss:$12 sps:$4 sm:$0xff]   ;;  %2130 = vmatprep.mubr.msk.bf16.mxu1 %vm462_vm0, %v2383_v3  ;;  %v2915_v9 = vld [vmem:[%s2886_s28 + $0x34] ss:$12 sps:$4 sm:$0xff]   ;;  %v2390_v10 = vld [vmem:[%s3540_s0 + $0x8] sm:$0xff]   ;;  %v2678_v11 = vmov 0.0  }
  0x5e   : > { %815 = vmatprep.subr.bf16.mxu0 %v2897_v4  ;;  %v2391_v7 = vld [vmem:[%s308_s12 + $0x8] ss:$12 sps:$4 sm:$0xff]   ;;  %v2936_v15 = vld [vmem:[%s2886_s28 + $0x48] ss:$12 sps:$4 sm:$0xff]   ;;  %v2952_v19 = vld [vmem:[%s2886_s28 + $0x20] ss:$12 sps:$4 sm:$0xff]  }
  0x5f   : > { %v2911_v8 = vld [vmem:[%s2886_s28 + $0x18] ss:$12 sps:$4 sm:$0xff]   ;;  %2128 = vmatprep.subr.bf16.mxu1 %v2391_v7  ;;  %v2923_v12 = vld [vmem:[%s2886_s28 + $0x30] ss:$12 sps:$4 sm:$0xff]   ;;  %v2402_v17 = vld [vmem:[%s3540_s0 + $0x18] sm:$0xff]   ;;  %vm2679_vm1 = vmmov 0  }
  0x60   : > { %1948 = vmatmul.mubr.msk.bf16.vlgmr.msra.gmra.mrb[0].mxu0 %vm462_vm0, %v2383_v3  ;;  %2129 = vmatpush3.bf16.msra.mxu1 %v2391_v7  ;;  %v2398_v13 = vld [vmem:[%s3540_s0 + $0x10] sm:$0xff]   ;;  %v2931_v14 = vld [vmem:[%s2886_s28 + $0x4c] ss:$12 sps:$4 sm:$0xff]   ;;  %v2948_v18 = vld [vmem:[%s2886_s28 + $0x8] ss:$12 sps:$4 sm:$0xff]   ;;  %v2680_v31 = vmov 0.0|0.0  }
  0x61   : > { %816 = vmatpush1.bf16.msra.mxu0 %v2900_v5  ;;  %517 = vmatprep.mubr.bf16.mxu0 %v2677_v0  ;;  %v2941_v16 = vld [vmem:[%s2886_s28 + $0x64] ss:$12 sps:$4 sm:$0xff]   ;;  %v2956_v20 = vld [vmem:[%s2886_s28 + $0x60] ss:$12 sps:$4 sm:$0xff]   ;;  %v2962_v21 = vld [vmem:[%s2886_s28 + $0x7c] ss:$12 sps:$4 sm:$0xff]  }
  0x62   : > { %817 = vmatprep.subr.bf16.mxu0 %v2903_v6  ;;  %2138 = vmatprep.subr.bf16.mxu1 %v2678_v11  ;;  %v2969_v22 = vld [vmem:[%s2886_s28 + $0x38] ss:$12 sps:$4 sm:$0xff]   ;;  %v2978_v24 = vld [vmem:[%s2886_s28 + $0x94] ss:$12 sps:$4 sm:$0xff]   ;;  %v2983_v25 = vld [vmem:[%s2886_s28 + $0x50] ss:$12 sps:$4 sm:$0xff]  }
  0x63   : > { %2131 = vmatmul.mubr.msk.bf16.vlgmr.msra.gmra.mrb[0].mxu1 %vm462_vm0, %v2390_v10  ;;  %v2974_v23 = vld [vmem:[%s2886_s28 + $0x78] ss:$12 sps:$4 sm:$0xff]   ;;  %v2987_v26 = vld [vmem:[%s2886_s28 + $0x90] ss:$12 sps:$4 sm:$0xff]   ;;  %v2997_v28 = vld [vmem:[%s2886_s28 + $0x68] ss:$12 sps:$4 sm:$0xff]  }
  0x64   : > { %2134 = vmatprep.mubr.msk.bf16.mxu1 %vm462_vm0, %v2398_v13  ;;  %2139 = vmatpush3.bf16.msra.mxu1 %v2948_v18  ;;  %v2992_v27 = vld [vmem:[%s2886_s28 + $0xac] ss:$12 sps:$4 sm:$0xff]   ;;  %v3001_v29 = vld [vmem:[%s2886_s28 + $0xa8] ss:$12 sps:$4 sm:$0xff]   ;;  %v3023_v33 = vld [vmem:[%s2886_s28 + $0xb0] ss:$12 sps:$4 sm:$0xff]  }
  0x65   : > { %818 = vmatpush1.bf16.msra.mxu0 %v2911_v8  ;;  %2140 = vmatprep.subr.bf16.mxu1 %v2678_v11  ;;  %v3008_v30 = vld [vmem:[%s2886_s28 + $0x80] ss:$12 sps:$4 sm:$0xff]   ;;  %v3015_v32 = vld [vmem:[%s2886_s28 + $0x98] ss:$12 sps:$4 sm:$0xff]   ;;  %p379_p0 = scmp.lt.s32.totalorder %s2663_s21, 1  ;;  %v412_v35 = vshrl.u32 %v411_v34, 7 }
  0x66   : > { %819 = vmatprep.subr.bf16.mxu0 %v2915_v9  ;;  %s677_s9 = smul.u32 56, %s2663_s21  ;;  %s1940_s27 = sshll.u32 %s2876_s13, 5 }
  0x67   : > { %s3062_s17 = scalar_select %p379_p0, %s2663_s21, 1  ;;  %v413_v36 = vsub.s32 0, %v412_v35  ;;  %v417_v38 = vsub.s32 1, %v412_v35  ;;  %v421_v41 = vsub.s32 2, %v412_v35 }
  0x68   : > { %1949 = vmatmul.mubr.msk.bf16.gmra.mrb[4].mxu0 %vm462_vm0, %v2390_v10  ;;  %2141 = vmatpush3.bf16.msra.mxu1 %v2952_v19  ;;  %s3088_s11 = sshra.s32 %s677_s9, 3  ;;  %s2046_s14 = smul.u32 40, %s2663_s21 }
  0x69   : > { %820 = vmatpush1.bf16.msra.mxu0 %v2923_v12  ;;  %527 = vmatprep.mubr.bf16.mxu0 %v2677_v0  ;;  %s2304_s10 = smul.u32 3, %s3062_s17  ;;  %s3096_s25 = scalar_lea.vmem %s3544_s4, %s3062_s17 }
  0x6a   : > { %821 = vmatprep.subr.bf16.mxu0 %v2931_v14  ;;  %2142 = vmatprep.subr.bf16.mxu1 %v2678_v11  ;;  %s2025_s16 = smul.u32 24, %s3088_s11  ;;  %s1984_s24 = sshll.u32 %s3088_s11, 2 }
  0x6b   : > { %2135 = vmatmul.mubr.msk.bf16.gmra.mrb[4].mxu1 %vm462_vm0, %v2402_v17  ;;  %s382_s1 = scalar_lea.vmem %s3542_s2, %s2304_s10  ;;  %s3106_s17 = scalar_lea.vmem [#allocation9], %s1940_s27 }
  0x6c   : > { %2154 = vmatprep.mubr.msk.bf16.mxu1 %vm2679_vm1, %v2678_v11  ;;  %2143 = vmatpush3.bf16.msra.mxu1 %v2969_v22  ;;  %v409_v37 = vld [vmem:[%s382_s1] sm:$0x7]  ;;  %s682_s30 = scalar_lea.vmem [#allocation2], %s2025_s16  ;;  %s919_s10 = scalar_lea.vmem %s3106_s17, %s1984_s24 [#allocation9] }
  0x6d   : > { %822 = vmatpush1.bf16.msra.mxu0 %v2936_v15  ;;  %2144 = vmatprep.subr.bf16.mxu1 %v2678_v11  ;;  %v3068_v39 = vrot.slane %v409_v37, %v413_v36  ;;  %v3070_v40 = vrot.slane %v409_v37, %v417_v38  ;;  %v422_v49 = vrot.slane %v409_v37, %v421_v41  ;;  %s3147_s12 = sadd.s32 8, %s2046_s14  ;;  %s2047_s15 = smul.u32 24, %s2663_s21 }
  0x6e   : > { %823 = vmatprep.subr.bf16.mxu0 %v2941_v16  ;;  %s924_s1 = sshra.s32 %s3147_s12, 3  ;;  %p3560_p12 = scmp.ne.s32.totalorder %s3552_s6, 0 }
  0x6f   : > { %s2028_s9 = smul.u32 24, %s924_s1  ;;  %s1989_s16 = sshll.u32 %s924_s1, 2 }
  0x70   : > { %1950 = vmatmul.mubr.msk.bf16.gmra.mrb[8].mxu0 %vm462_vm0, %v2398_v13  ;;  %2145 = vmatpush3.bf16.msra.mxu1 %v2983_v25  ;;  %s3197_s29 = sadd.s32 16, %s2047_s15  ;;  %s2032_s1 = sshll.u32 %s2663_s21, 3 }
  0x71   : > { %824 = vmatpush1.bf16.msra.mxu0 %v2956_v20  ;;  %537 = vmatprep.mubr.bf16.mxu0 %v2677_v0  ;;  %s928_s11 = scalar_lea.vmem [#allocation2], %s2028_s9  ;;  %s1041_s27 = sshra.s32 %s3197_s29, 3 }
  0x72   : > { %825 = vmatprep.subr.bf16.mxu0 %v2962_v21  ;;  %2146 = vmatprep.subr.bf16.mxu1 %v2678_v11  ;;  %s2031_s24 = smul.u32 24, %s1041_s27  ;;  %s1994_s14 = sshll.u32 %s1041_s27, 2 }
  0x73   : > { %s1153_s12 = scalar_lea.vmem %s3106_s17, %s1994_s14 [#allocation9]  ;;  %s3247_s9 = sadd.s32 24, %s2032_s1 }
  0x74   : > { %2147 = vmatpush3.bf16.msra.mxu1 %v2997_v28  ;;  %s1271_s27 = ssub.s32 4, %s2663_s21 }
  0x75   : > { %826 = vmatpush1.bf16.msra.mxu0 %v2974_v23  ;;  %2148 = vmatprep.subr.bf16.mxu1 %v2678_v11 }
  0x76   : > { %827 = vmatprep.subr.bf16.mxu0 %v2978_v24 }
  0x78   : > { %1951 = vmatmul.mubr.msk.bf16.gmra.mrb[12].mxu0 %vm462_vm0, %v2402_v17  ;;  %2149 = vmatpush3.bf16.msra.mxu1 %v3008_v30 }
  0x79   : > { %828 = vmatpush1.bf16.msra.mxu0 %v2987_v26  ;;  %847 = vmatprep.mubr.bf16.mxu0 %v2677_v0 }
  0x7a   : > { %829 = vmatprep.subr.bf16.mxu0 %v2992_v27  ;;  %2150 = vmatprep.subr.bf16.mxu1 %v2678_v11 }
  0x7c   : > { %2151 = vmatpush3.bf16.msra.mxu1 %v3015_v32 }
  0x7d   : > { %830 = vmatpush1.bf16.msra.mxu0 %v3001_v29  ;;  %2152 = vmatprep.subr.bf16.mxu1 %v2678_v11 }
  0x7e   : > { %932 = vmatprep.subr.bf16.mxu0 %v2897_v4 }
  0x80   : > { %848 = vmatmul.mubr.bf16.vlgmr.msra.gmra.mrb[16].mxu0 %v2680_v31  ;;  %2153 = vmatpush3.bf16.msra.mxu1 %v3023_v33 }
  0x81   : > { %933 = vmatpush1.bf16.msra.mxu0 %v2900_v5  ;;  %964 = vmatprep.mubr.bf16.mxu0 %v2677_v0 }
  0x82   : > { %934 = vmatprep.subr.bf16.mxu0 %v2903_v6  ;;  %2158 = vmatprep.subr.bf16.mxu1 %v2678_v11 }
  0x83   : > { %2155 = vmatmul.mubr.bf16.vlgmr.msra.gmra.mrb[8].mxu1 %v2680_v31 }
  0x84   : > { %2159 = vmatpush3.bf16.msra.mxu1 %v2948_v18  ;;  %2174 = vmatprep.mubr.msk.bf16.mxu1 %vm2679_vm1, %v2678_v11 }
  0x85   : > { %935 = vmatpush1.bf16.msra.mxu0 %v2911_v8  ;;  %2160 = vmatprep.subr.bf16.mxu1 %v2678_v11 }
  0x86   : > { %936 = vmatprep.subr.bf16.mxu0 %v2915_v9 }
  0x88   : > { %2161 = vmatpush3.bf16.msra.mxu1 %v2952_v19 }
  0x89   : > { %937 = vmatpush1.bf16.msra.mxu0 %v2923_v12  ;;  %2162 = vmatprep.subr.bf16.mxu1 %v2678_v11 }
  0x8a   : > { %938 = vmatprep.subr.bf16.mxu0 %v2931_v14 }
  0x8c   : > { %2163 = vmatpush3.bf16.msra.mxu1 %v2969_v22 }
  0x8d   : > { %939 = vmatpush1.bf16.msra.mxu0 %v2936_v15  ;;  %2164 = vmatprep.subr.bf16.mxu1 %v2678_v11 }
  0x8e   : > { %940 = vmatprep.subr.bf16.mxu0 %v2941_v16 }
  0x90   : > { %2165 = vmatpush3.bf16.msra.mxu1 %v2983_v25 }
  0x91   : > { %941 = vmatpush1.bf16.msra.mxu0 %v2956_v20  ;;  %2166 = vmatprep.subr.bf16.mxu1 %v2678_v11 }
  0x92   : > { %942 = vmatprep.subr.bf16.mxu0 %v2962_v21 }
  0x94   : > { %2167 = vmatpush3.bf16.msra.mxu1 %v2997_v28 }
  0x95   : > { %943 = vmatpush1.bf16.msra.mxu0 %v2974_v23  ;;  %2168 = vmatprep.subr.bf16.mxu1 %v2678_v11 }
  0x96   : > { %944 = vmatprep.subr.bf16.mxu0 %v2978_v24 }
  0x98   : > { %2169 = vmatpush3.bf16.msra.mxu1 %v3008_v30 }
  0x99   : > { %945 = vmatpush1.bf16.msra.mxu0 %v2987_v26  ;;  %2170 = vmatprep.subr.bf16.mxu1 %v2678_v11 }
  0x9a   : > { %946 = vmatprep.subr.bf16.mxu0 %v2992_v27 }
  0x9c   : > { %2171 = vmatpush3.bf16.msra.mxu1 %v3015_v32 }
  0x9d   : > { %947 = vmatpush1.bf16.msra.mxu0 %v3001_v29  ;;  %2172 = vmatprep.subr.bf16.mxu1 %v2678_v11 }
  0x9e   : > { %1049 = vmatprep.subr.bf16.mxu0 %v2897_v4 }
  0xa0   : > { %2173 = vmatpush3.bf16.msra.mxu1 %v3023_v33 }
  0xa1   : > { %2178 = vmatprep.subr.bf16.mxu1 %v2678_v11 }
 0x133   : > { %v509_v42 = vpop.f32.mrb[0].mxu0 }
 0x134   : > { %v510_v43 = vadd.f32 %v509_v42, %v3068_v39  ;;  %v511_v44 = vpop.f32.mrb[1].mxu0 }
 0x135   : > { %v512_v45 = vadd.f32 %v511_v44, %v3070_v40  ;;  %v513_v46 = vpop.f32.mrb[2].mxu0 }
 0x136   : > { %613 = vst [vmem:[#allocation2] sm:$0xff] %v510_v43  ;;  %v514_v47 = vadd.f32 %v513_v46, %v3068_v39  ;;  %v515_v48 = vpop.f32.mrb[3].mxu0  ;;  %v2132_v51 = vpop.f32.mrb[0].mxu1 }
 0x137   : > { %614 = vst [vmem:[#allocation2 + $0x8] sm:$0xff] %v512_v45  ;;  %v516_v50 = vadd.f32 %v515_v48, %v3070_v40  ;;  %v591_v52 = vadd.f32 %v2132_v51, %v422_v49  ;;  %v582_v53 = vpop.f32.mrb[1].mxu1 }
 0x138   : > { %616 = vst [vmem:[#allocation2 + $0x18] sm:$0xff] %v514_v47  ;;  %v583_v55 = vadd.f32 %v582_v53, %v422_v49  ;;  %v2133_v56 = vpop.f32.mrb[2].mxu1 }
 0x139   : > { %617 = vst [vmem:[#allocation2 + $0x20] sm:$0xff] %v516_v50  ;;  %621 = vst [vmem:[#allocation2 + $0x40] sm:$0xff] %v591_v52  ;;  %v594_v59 = vadd.f32 %v2133_v56, %v422_v49  ;;  %v585_v60 = vpop.f32.mrb[3].mxu1 }
 0x13a   : > { %615 = vst [vmem:[#allocation2 + $0x10] sm:$0xff] %v583_v55  ;;  %v586_v63 = vadd.f32 %v585_v60, %v422_v49 }
 0x13b   : > { %v519_v54 = vpop.f32.mrb[4].mxu0  ;;  %624 = vst [vmem:[#allocation2 + $0x58] sm:$0xff] %v594_v59 }
 0x13c   : > { %v520_v57 = vadd.f32 %v519_v54, %v3068_v39  ;;  %v521_v58 = vpop.f32.mrb[5].mxu0  ;;  %618 = vst [vmem:[#allocation2 + $0x28] sm:$0xff] %v586_v63 }
 0x13d   : > { %v522_v61 = vadd.f32 %v521_v58, %v3070_v40  ;;  %v523_v62 = vpop.f32.mrb[6].mxu0 }
 0x13e   : > { %619 = vst [vmem:[#allocation2 + $0x30] sm:$0xff] %v520_v57  ;;  %v524_v1 = vadd.f32 %v523_v62, %v3068_v39  ;;  %v525_v2 = vpop.f32.mrb[7].mxu0  ;;  %v2136_v7 = vpop.f32.mrb[4].mxu1 }
 0x13f   : > { %620 = vst [vmem:[#allocation2 + $0x38] sm:$0xff] %v522_v61  ;;  %v526_v3 = vadd.f32 %v525_v2, %v3070_v40  ;;  %v607_v10 = vadd.f32 %v2136_v7, %v422_v49  ;;  %v598_v13 = vpop.f32.mrb[5].mxu1 }
 0x140   : > { %622 = vst [vmem:[#allocation2 + $0x48] sm:$0xff] %v524_v1  ;;  %v599_v31 = vadd.f32 %v598_v13, %v422_v49  ;;  %v2137_v34 = vpop.f32.mrb[6].mxu1  ;;  %v3099_v13 = vld [vmem:[%s3096_s25] ss:$0 sm:$0xff] }
 0x141   : > { %623 = vst [vmem:[#allocation2 + $0x50] sm:$0xff] %v526_v3  ;;  %633 = vst [vmem:[#allocation2 + $0xa0] sm:$0xff] %v607_v10  ;;  %v610_v37 = vadd.f32 %v2137_v34, %v422_v49  ;;  %v601_v38 = vpop.f32.mrb[7].mxu1 }
 0x142   : > { %627 = vst [vmem:[#allocation2 + $0x70] sm:$0xff] %v599_v31  ;;  %v602_v43 = vadd.f32 %v601_v38, %v422_v49 }
 0x143   : > { %v529_v17 = vpop.f32.mrb[8].mxu0  ;;  %636 = vst [vmem:[#allocation2 + $0xb8] sm:$0xff] %v610_v37 }
 0x144   : > { %v530_v35 = vadd.f32 %v529_v17, %v3068_v39  ;;  %v531_v36 = vpop.f32.mrb[9].mxu0  ;;  %630 = vst [vmem:[#allocation2 + $0x88] sm:$0xff] %v602_v43 }
 0x145   : > { %v532_v41 = vadd.f32 %v531_v36, %v3070_v40  ;;  %v533_v42 = vpop.f32.mrb[10].mxu0 }
 0x146   : > { %625 = vst [vmem:[#allocation2 + $0x60] sm:$0xff] %v530_v35  ;;  %v534_v44 = vadd.f32 %v533_v42, %v3068_v39  ;;  %v535_v45 = vpop.f32.mrb[11].mxu0 }
 0x147   : > { %626 = vst [vmem:[#allocation2 + $0x68] sm:$0xff] %v532_v41  ;;  %v536_v46 = vadd.f32 %v535_v45, %v3070_v40 }
 0x148   : > { %628 = vst [vmem:[#allocation2 + $0x78] sm:$0xff] %v534_v44 }
 0x149   : > { %629 = vst [vmem:[#allocation2 + $0x80] sm:$0xff] %v536_v46 }
 0x14b   : > { %v539_v47 = vpop.f32.mrb[12].mxu0 }
 0x14c   : > { %v540_v48 = vadd.f32 %v539_v47, %v3068_v39  ;;  %v541_v50 = vpop.f32.mrb[13].mxu0 }
 0x14d   : > { %v542_v51 = vadd.f32 %v541_v50, %v3070_v40  ;;  %v543_v52 = vpop.f32.mrb[14].mxu0 }
 0x14e   : > { %631 = vst [vmem:[#allocation2 + $0x90] sm:$0xff] %v540_v48  ;;  %v544_v49 = vadd.f32 %v543_v52, %v3068_v39  ;;  %v545_v53 = vpop.f32.mrb[15].mxu0 }
 0x14f   : > { %632 = vst [vmem:[#allocation2 + $0x98] sm:$0xff] %v542_v51  ;;  %v546_v54 = vadd.f32 %v545_v53, %v3070_v40 }
 0x150   : > { %634 = vst [vmem:[#allocation2 + $0xa8] sm:$0xff] %v544_v49 }
 0x151   : > { %635 = vst [vmem:[#allocation2 + $0xb0] sm:$0xff] %v546_v54 }
 0x153   : > { %v849_v55 = vpop.f32.mrb[16].mxu0 }
 0x154   : > { %v851_v56 = vpop.f32.mrb[17].mxu0 }
 0x155   : > { %v853_v57 = vpop.f32.mrb[18].mxu0 }
 0x156   : > { %v854_v58 = vpop.f32.mrb[19].mxu0  ;;  %v890_v62 = vpop.f32.mrb[8].mxu1 }
 0x157   : > { %v2156_v63 = vpop.f32.mrb[9].mxu1  ;;  %v910_v17 = vadd.f32 %v3099_v13, %v890_v62 }
 0x158   : > { %v683_v59 = vld [vmem:[%s682_s30] sm:$0xff]  ;;  %v684_v39 = vld [vmem:[%s682_s30 + $0x8] sm:$0xff]  ;;  %v893_v1 = vpop.f32.mrb[10].mxu1  ;;  %v685_v36 = vld [vmem:[%s682_s30 + $0x10] sm:$0xff]  ;;  %s1036_s30 = scalar_lea.vmem %s3106_s17, %s1989_s16 [#allocation9] }
 0x159   : > { %v896_v60 = vadd.f32 %v849_v55, %v683_v59  ;;  %v903_v2 = vadd.f32 %v851_v56, %v684_v39  ;;  %v2157_v3 = vpop.f32.mrb[11].mxu1  ;;  %v929_v47 = vld [vmem:[%s928_s11] sm:$0xff]  ;;  %v930_v58 = vld [vmem:[%s928_s11 + $0x8] sm:$0xff] }
 0x15a   : > { %v931_v3 = vld [vmem:[%s928_s11 + $0x10] sm:$0xff]  ;;  %s1157_s11 = sshra.s32 %s3247_s9, 3 }
 0x15b   : > { %v1982_v61 = vmul.f32 -1.442695, %v896_v60  ;;  %v1983_v40 = vmul.f32 -1.442695, %v903_v2  ;;  %s2034_s16 = smul.u32 24, %s1157_s11  ;;  %s1999_s15 = sshll.u32 %s1157_s11, 2 }
 0x15c   : > { %s1269_s29 = scalar_lea.vmem %s3106_s17, %s1999_s15 [#allocation9]  ;;  %s2048_s11 = smul.u32 4294967272, %s2663_s21 }
 0x15d   : > { %2420 = vpow2.f32 %v1982_v61 }
 0x15e   : > { %2422 = vpow2.f32 %v1983_v40 }
 0x167   : > { %v2421_v7 = vpop.eup %2420 }
 0x168   : > { %v900_v10 = vadd.f32 1.0, %v2421_v7  ;;  %v2423_v31 = vpop.eup %2422 }
 0x169   : > { %v907_v37 = vadd.f32 1.0, %v2423_v31 }
 0x16a   : > { %2424 = vrcp.f32 %v900_v10 }
 0x174   : > { %v2425_v34 = vpop.eup %2424 }
 0x175   : > { %v911_v35 = vmul.f32 %v2425_v34, %v910_v17 }
 0x177   : > { %v912_v38 = vadd.f32 %v911_v35, %v685_v36 }
 0x179   : > { %2426 = vtanh.f32 %v912_v38 }
 0x17a   : > { %2428 = vrcp.f32 %v907_v37 }
 0x183   : > { %v2427_v41 = vpop.eup %2426 }
 0x184   : > { %v914_v42 = vsub.f32 0.0, %v2427_v41  ;;  %v2429_v43 = vpop.eup %2428 }
 0x186   : > { %v915_v44 = vmul.f32 %v2429_v43, %v914_v42 }
 0x188   : > { %v3104_v45 = vadd.f32 %v2427_v41, %v915_v44 }
 0x18a   : > { %v917_v46 = vpack.c.bf16 %v3104_v45, %v3104_v45 }
 0x18c   : > { %920 = vst [vmem:[%s919_s10] sm:$0xf] %v917_v46  ;;  %965 = vmatmul.mubr.bf16.vlgmr.msra.gmra.mrb[20].mxu0 %v917_v46  ;;  %2175 = vmatmul.mubr.bf16.vlgmr.msra.gmra.mrb[12].mxu1 %v917_v46  ;;  %s1045_s10 = scalar_lea.vmem [#allocation2], %s2031_s24  ;;  %s3306_s24 = sshll.u32 %s1271_s27, 3 }
 0x18d   : > { %1050 = vmatpush1.bf16.msra.mxu0 %v2900_v5  ;;  %2179 = vmatpush3.bf16.msra.mxu1 %v2948_v18  ;;  %v1046_v37 = vld [vmem:[%s1045_s10] sm:$0xff] }
 0x18e   : > { %1051 = vmatprep.subr.bf16.mxu0 %v2903_v6  ;;  %2180 = vmatprep.subr.bf16.mxu1 %v2678_v11 }
 0x18f   : > { %1081 = vmatprep.mubr.bf16.mxu0 %v2677_v0  ;;  %2194 = vmatprep.mubr.msk.bf16.mxu1 %vm2679_vm1, %v2678_v11 }
 0x191   : > { %1052 = vmatpush1.bf16.msra.mxu0 %v2911_v8  ;;  %2181 = vmatpush3.bf16.msra.mxu1 %v2952_v19 }
 0x192   : > { %1053 = vmatprep.subr.bf16.mxu0 %v2915_v9  ;;  %2182 = vmatprep.subr.bf16.mxu1 %v2678_v11 }
 0x195   : > { %1054 = vmatpush1.bf16.msra.mxu0 %v2923_v12  ;;  %2183 = vmatpush3.bf16.msra.mxu1 %v2969_v22 }
 0x196   : > { %1055 = vmatprep.subr.bf16.mxu0 %v2931_v14  ;;  %2184 = vmatprep.subr.bf16.mxu1 %v2678_v11 }
 0x199   : > { %1056 = vmatpush1.bf16.msra.mxu0 %v2936_v15  ;;  %2185 = vmatpush3.bf16.msra.mxu1 %v2983_v25 }
 0x19a   : > { %1057 = vmatprep.subr.bf16.mxu0 %v2941_v16  ;;  %2186 = vmatprep.subr.bf16.mxu1 %v2678_v11 }
 0x19d   : > { %1058 = vmatpush1.bf16.msra.mxu0 %v2956_v20  ;;  %2187 = vmatpush3.bf16.msra.mxu1 %v2997_v28 }
 0x19e   : > { %1059 = vmatprep.subr.bf16.mxu0 %v2962_v21  ;;  %2188 = vmatprep.subr.bf16.mxu1 %v2678_v11 }
 0x1a1   : > { %1060 = vmatpush1.bf16.msra.mxu0 %v2974_v23  ;;  %2189 = vmatpush3.bf16.msra.mxu1 %v3008_v30 }
 0x1a2   : > { %1061 = vmatprep.subr.bf16.mxu0 %v2978_v24  ;;  %2190 = vmatprep.subr.bf16.mxu1 %v2678_v11 }
 0x1a5   : > { %1062 = vmatpush1.bf16.msra.mxu0 %v2987_v26  ;;  %2191 = vmatpush3.bf16.msra.mxu1 %v3015_v32 }
 0x1a6   : > { %1063 = vmatprep.subr.bf16.mxu0 %v2992_v27  ;;  %2192 = vmatprep.subr.bf16.mxu1 %v2678_v11 }
 0x1a9   : > { %1064 = vmatpush1.bf16.msra.mxu0 %v3001_v29  ;;  %2193 = vmatpush3.bf16.msra.mxu1 %v3023_v33 }
 0x1aa   : > { %1165 = vmatprep.subr.bf16.mxu0 %v2897_v4  ;;  %2198 = vmatprep.subr.bf16.mxu1 %v2678_v11 }
 0x25f   : > { %v966_v48 = vpop.f32.mrb[20].mxu0  ;;  %v1007_v50 = vpop.f32.mrb[12].mxu1 }
 0x260   : > { %v1013_v51 = vadd.f32 %v966_v48, %v929_v47  ;;  %v968_v52 = vpop.f32.mrb[21].mxu0  ;;  %v2176_v49 = vpop.f32.mrb[13].mxu1  ;;  %v1027_v63 = vadd.f32 %v3099_v13, %v1007_v50 }
 0x261   : > { %v970_v53 = vpop.f32.mrb[22].mxu0  ;;  %v1010_v54 = vpop.f32.mrb[14].mxu1  ;;  %v1020_v59 = vadd.f32 %v968_v52, %v930_v58 }
 0x262   : > { %v1987_v55 = vmul.f32 -1.442695, %v1013_v51  ;;  %v971_v56 = vpop.f32.mrb[23].mxu0  ;;  %v2177_v57 = vpop.f32.mrb[15].mxu1  ;;  %v1047_v51 = vld [vmem:[%s1045_s10 + $0x8] sm:$0xff] }
 0x263   : > { %v1988_v60 = vmul.f32 -1.442695, %v1020_v59  ;;  %v1048_v59 = vld [vmem:[%s1045_s10 + $0x10] sm:$0xff]  ;;  %s1273_s10 = sshra.s32 %s3306_s24, 3 }
 0x264   : > { %2430 = vpow2.f32 %v1987_v55  ;;  %s2035_s14 = smul.u32 24, %s1273_s10  ;;  %s2004_s1 = sshll.u32 %s1273_s10, 2 }
 0x265   : > { %2432 = vpow2.f32 %v1988_v60  ;;  %s1385_s9 = scalar_lea.vmem %s3106_s17, %s2004_s1 [#allocation9]  ;;  %s2049_s10 = smul.u32 4294967256, %s2663_s21 }
 0x26e   : > { %v2431_v61 = vpop.eup %2430 }
 0x26f   : > { %v1017_v39 = vadd.f32 1.0, %v2431_v61  ;;  %v2433_v62 = vpop.eup %2432 }
 0x270   : > { %v1024_v7 = vadd.f32 1.0, %v2433_v62 }
 0x271   : > { %2434 = vrcp.f32 %v1017_v39 }
 0x27b   : > { %v2435_v1 = vpop.eup %2434 }
 0x27c   : > { %v1028_v2 = vmul.f32 %v2435_v1, %v1027_v63 }
 0x27e   : > { %v1029_v40 = vadd.f32 %v1028_v2, %v931_v3 }
 0x280   : > { %2436 = vtanh.f32 %v1029_v40 }
 0x281   : > { %2438 = vrcp.f32 %v1024_v7 }
 0x28a   : > { %v2437_v10 = vpop.eup %2436 }
 0x28b   : > { %v1031_v17 = vsub.f32 %v3104_v45, %v2437_v10  ;;  %v2439_v31 = vpop.eup %2438 }
 0x28d   : > { %v1032_v34 = vmul.f32 %v2439_v31, %v1031_v17 }
 0x28f   : > { %v3156_v35 = vadd.f32 %v2437_v10, %v1032_v34 }
 0x291   : > { %v1034_v36 = vpack.c.bf16 %v3156_v35, %v3156_v35 }
 0x293   : > { %1037 = vst [vmem:[%s1036_s30] sm:$0xf] %v1034_v36  ;;  %1082 = vmatmul.mubr.bf16.vlgmr.msra.gmra.mrb[24].mxu0 %v1034_v36  ;;  %2195 = vmatmul.mubr.bf16.vlgmr.msra.gmra.mrb[16].mxu1 %v1034_v36  ;;  %s1161_s30 = scalar_lea.vmem [#allocation2], %s2034_s16  ;;  %s3416_s16 = sadd.s32 40, %s2048_s11 }
 0x294   : > { %1166 = vmatpush1.bf16.msra.mxu0 %v2900_v5  ;;  %2199 = vmatpush3.bf16.msra.mxu1 %v2948_v18 }
 0x295   : > { %1167 = vmatprep.subr.bf16.mxu0 %v2903_v6  ;;  %2200 = vmatprep.subr.bf16.mxu1 %v2678_v11 }
 0x296   : > { %1197 = vmatprep.mubr.bf16.mxu0 %v2677_v0  ;;  %2214 = vmatprep.mubr.msk.bf16.mxu1 %vm2679_vm1, %v2678_v11 }
 0x298   : > { %1168 = vmatpush1.bf16.msra.mxu0 %v2911_v8  ;;  %2201 = vmatpush3.bf16.msra.mxu1 %v2952_v19 }
 0x299   : > { %1169 = vmatprep.subr.bf16.mxu0 %v2915_v9  ;;  %2202 = vmatprep.subr.bf16.mxu1 %v2678_v11 }
 0x29c   : > { %1170 = vmatpush1.bf16.msra.mxu0 %v2923_v12  ;;  %2203 = vmatpush3.bf16.msra.mxu1 %v2969_v22 }
 0x29d   : > { %1171 = vmatprep.subr.bf16.mxu0 %v2931_v14  ;;  %2204 = vmatprep.subr.bf16.mxu1 %v2678_v11 }
 0x2a0   : > { %1172 = vmatpush1.bf16.msra.mxu0 %v2936_v15  ;;  %2205 = vmatpush3.bf16.msra.mxu1 %v2983_v25 }
 0x2a1   : > { %1173 = vmatprep.subr.bf16.mxu0 %v2941_v16  ;;  %2206 = vmatprep.subr.bf16.mxu1 %v2678_v11 }
 0x2a4   : > { %1174 = vmatpush1.bf16.msra.mxu0 %v2956_v20  ;;  %2207 = vmatpush3.bf16.msra.mxu1 %v2997_v28 }
 0x2a5   : > { %1175 = vmatprep.subr.bf16.mxu0 %v2962_v21  ;;  %2208 = vmatprep.subr.bf16.mxu1 %v2678_v11 }
 0x2a8   : > { %1176 = vmatpush1.bf16.msra.mxu0 %v2974_v23  ;;  %2209 = vmatpush3.bf16.msra.mxu1 %v3008_v30 }
 0x2a9   : > { %1177 = vmatprep.subr.bf16.mxu0 %v2978_v24  ;;  %2210 = vmatprep.subr.bf16.mxu1 %v2678_v11 }
 0x2ac   : > { %1178 = vmatpush1.bf16.msra.mxu0 %v2987_v26  ;;  %2211 = vmatpush3.bf16.msra.mxu1 %v3015_v32 }
 0x2ad   : > { %1179 = vmatprep.subr.bf16.mxu0 %v2992_v27  ;;  %2212 = vmatprep.subr.bf16.mxu1 %v2678_v11 }
 0x2b0   : > { %1180 = vmatpush1.bf16.msra.mxu0 %v3001_v29  ;;  %2213 = vmatpush3.bf16.msra.mxu1 %v3023_v33 }
 0x2b1   : > { %1281 = vmatprep.subr.bf16.mxu0 %v2897_v4  ;;  %2218 = vmatprep.subr.bf16.mxu1 %v2678_v11 }
 0x366   : > { %v1083_v38 = vpop.f32.mrb[24].mxu0  ;;  %v1124_v41 = vpop.f32.mrb[16].mxu1 }
 0x367   : > { %v1130_v42 = vadd.f32 %v1083_v38, %v1046_v37  ;;  %v1085_v43 = vpop.f32.mrb[25].mxu0  ;;  %v2196_v44 = vpop.f32.mrb[17].mxu1  ;;  %v1144_v56 = vadd.f32 %v3099_v13, %v1124_v41  ;;  %v1163_v37 = vld [vmem:[%s1161_s30 + $0x8] sm:$0xff] }
 0x368   : > { %v1087_v45 = vpop.f32.mrb[26].mxu0  ;;  %v1127_v46 = vpop.f32.mrb[18].mxu1  ;;  %v1137_v52 = vadd.f32 %v1085_v43, %v1047_v51 }
 0x369   : > { %v1992_v47 = vmul.f32 -1.442695, %v1130_v42  ;;  %v1088_v48 = vpop.f32.mrb[27].mxu0  ;;  %v2197_v50 = vpop.f32.mrb[19].mxu1 }
 0x36a   : > { %v1993_v49 = vmul.f32 -1.442695, %v1137_v52  ;;  %v1164_v48 = vld [vmem:[%s1161_s30 + $0x10] sm:$0xff] }
 0x36b   : > { %2440 = vpow2.f32 %v1992_v47 }
 0x36c   : > { %2442 = vpow2.f32 %v1993_v49 }
 0x375   : > { %v2441_v53 = vpop.eup %2440 }
 0x376   : > { %v1134_v54 = vadd.f32 1.0, %v2441_v53  ;;  %v2443_v55 = vpop.eup %2442 }
 0x377   : > { %v1141_v61 = vadd.f32 1.0, %v2443_v55 }
 0x378   : > { %2444 = vrcp.f32 %v1134_v54 }
 0x382   : > { %v2445_v57 = vpop.eup %2444 }
 0x383   : > { %v1145_v58 = vmul.f32 %v2445_v57, %v1144_v56  ;;  %v3262_v57 = vld [vmem:[%s2886_s28] ss:$12 sps:$4 sm:$0xff]  }
 0x385   : > { %v1146_v60 = vadd.f32 %v1145_v58, %v1048_v59  ;;  %v3267_v58 = vld [vmem:[%s2886_s28 + $0x1c] ss:$12 sps:$4 sm:$0xff]  }
 0x387   : > { %2446 = vtanh.f32 %v1146_v60 }
 0x388   : > { %2448 = vrcp.f32 %v1141_v61 }
 0x391   : > { %v2447_v39 = vpop.eup %2446 }
 0x392   : > { %v1148_v62 = vsub.f32 %v3156_v35, %v2447_v39  ;;  %v2449_v63 = vpop.eup %2448 }
 0x394   : > { %v1149_v1 = vmul.f32 %v2449_v63, %v1148_v62 }
 0x396   : > { %v3206_v2 = vadd.f32 %v2447_v39, %v1149_v1 }
 0x398   : > { %v1151_v3 = vpack.c.bf16 %v3206_v2, %v3206_v2 }
 0x39a   : > { %1154 = vst [vmem:[%s1153_s12] sm:$0xf] %v1151_v3  ;;  %1198 = vmatmul.mubr.bf16.vlgmr.msra.gmra.mrb[28].mxu0 %v1151_v3  ;;  %2215 = vmatmul.mubr.bf16.vlgmr.msra.gmra.mrb[20].mxu1 %v1151_v3  ;;  %s1277_s12 = scalar_lea.vmem [#allocation2], %s2035_s14  ;;  %s3464_s14 = sadd.s32 48, %s2049_s10 }
 0x39b   : > { %1282 = vmatpush1.bf16.msra.mxu0 %v2900_v5  ;;  %2219 = vmatpush3.bf16.msra.mxu1 %v2948_v18  ;;  %v1162_v5 = vld [vmem:[%s1161_s30] sm:$0xff]  ;;  %v1280_v60 = vld [vmem:[%s1277_s12 + $0x10] sm:$0xff]  ;;  %s1390_s30 = sshra.s32 %s3416_s16, 3  ;;  %s2050_s16 = smul.u32 4294967240, %s2663_s21 }
 0x39c   : > { %1283 = vmatprep.subr.bf16.mxu0 %v2903_v6  ;;  %2220 = vmatprep.subr.bf16.mxu1 %v2678_v11  ;;  %s2038_s15 = smul.u32 24, %s1390_s30  ;;  %s2009_s27 = sshll.u32 %s1390_s30, 2 }
 0x39d   : > { %1313 = vmatprep.mubr.bf16.mxu0 %v2677_v0  ;;  %2234 = vmatprep.mubr.msk.bf16.mxu1 %vm2679_vm1, %v2678_v11  ;;  %s1502_s24 = scalar_lea.vmem %s3106_s17, %s2009_s27 [#allocation9]  ;;  %s3475_s30 = sadd.s32 56, %s2050_s16 }
 0x39e   : > { %s2045_s10 = sshll.u32 %s2663_s21, 9  ;;  %s2681_s21 = smov [#allocation9]  }
 0x39f   : > { %1284 = vmatpush1.bf16.msra.mxu0 %v2911_v8  ;;  %2221 = vmatpush3.bf16.msra.mxu1 %v2952_v19 }
 0x3a0   : > { %1285 = vmatprep.subr.bf16.mxu0 %v2915_v9  ;;  %2222 = vmatprep.subr.bf16.mxu1 %v2678_v11 }
 0x3a3   : > { %1286 = vmatpush1.bf16.msra.mxu0 %v2923_v12  ;;  %2223 = vmatpush3.bf16.msra.mxu1 %v2969_v22 }
 0x3a4   : > { %1287 = vmatprep.subr.bf16.mxu0 %v2931_v14  ;;  %2224 = vmatprep.subr.bf16.mxu1 %v2678_v11 }
 0x3a7   : > { %1288 = vmatpush1.bf16.msra.mxu0 %v2936_v15  ;;  %2225 = vmatpush3.bf16.msra.mxu1 %v2983_v25 }
 0x3a8   : > { %1289 = vmatprep.subr.bf16.mxu0 %v2941_v16  ;;  %2226 = vmatprep.subr.bf16.mxu1 %v2678_v11 }
 0x3ab   : > { %1290 = vmatpush1.bf16.msra.mxu0 %v2956_v20  ;;  %2227 = vmatpush3.bf16.msra.mxu1 %v2997_v28 }
 0x3ac   : > { %1291 = vmatprep.subr.bf16.mxu0 %v2962_v21  ;;  %2228 = vmatprep.subr.bf16.mxu1 %v2678_v11 }
 0x3af   : > { %1292 = vmatpush1.bf16.msra.mxu0 %v2974_v23  ;;  %2229 = vmatpush3.bf16.msra.mxu1 %v3008_v30 }
 0x3b0   : > { %1293 = vmatprep.subr.bf16.mxu0 %v2978_v24  ;;  %2230 = vmatprep.subr.bf16.mxu1 %v2678_v11 }
 0x3b3   : > { %1294 = vmatpush1.bf16.msra.mxu0 %v2987_v26  ;;  %2231 = vmatpush3.bf16.msra.mxu1 %v3015_v32 }
 0x3b4   : > { %1295 = vmatprep.subr.bf16.mxu0 %v2992_v27  ;;  %2232 = vmatprep.subr.bf16.mxu1 %v2678_v11 }
 0x3b7   : > { %1296 = vmatpush1.bf16.msra.mxu0 %v3001_v29  ;;  %2233 = vmatpush3.bf16.msra.mxu1 %v3023_v33 }
 0x3b8   : > { %1398 = vmatprep.subr.bf16.mxu0 %v2897_v4  ;;  %2238 = vmatprep.subr.bf16.mxu1 %v2678_v11 }
 0x46d   : > { %v1199_v6 = vpop.f32.mrb[28].mxu0  ;;  %v1240_v40 = vpop.f32.mrb[20].mxu1 }
 0x46e   : > { %v1246_v7 = vadd.f32 %v1199_v6, %v1162_v5  ;;  %v1201_v10 = vpop.f32.mrb[29].mxu0  ;;  %v2216_v17 = vpop.f32.mrb[21].mxu1  ;;  %v1260_v45 = vadd.f32 %v3099_v13, %v1240_v40  ;;  %v3322_v6 = vld [vmem:[%s2886_s28 + $0x8] ss:$12 sps:$4 sm:$0xff]   ;;  %v3331_v40 = vld [vmem:[%s2886_s28 + $0x18] ss:$12 sps:$4 sm:$0xff]  }
 0x46f   : > { %v1203_v31 = vpop.f32.mrb[30].mxu0  ;;  %v1243_v34 = vpop.f32.mrb[22].mxu1  ;;  %v1253_v38 = vadd.f32 %v1201_v10, %v1163_v37  ;;  %v3339_v10 = vld [vmem:[%s2886_s28 + $0x34] ss:$12 sps:$4 sm:$0xff]   ;;  %v3344_v17 = vld [vmem:[%s2886_s28 + $0x30] ss:$12 sps:$4 sm:$0xff]  }
 0x470   : > { %v1997_v4 = vmul.f32 -1.442695, %v1246_v7  ;;  %v1204_v35 = vpop.f32.mrb[31].mxu0  ;;  %v2217_v36 = vpop.f32.mrb[23].mxu1  ;;  %v3335_v7 = vld [vmem:[%s2886_s28 + $0x20] ss:$12 sps:$4 sm:$0xff]  }
 0x471   : > { %v1998_v41 = vmul.f32 -1.442695, %v1253_v38  ;;  %v3348_v31 = vld [vmem:[%s2886_s28 + $0x38] ss:$12 sps:$4 sm:$0xff]   ;;  %v3361_v35 = vld [vmem:[%s2886_s28 + $0x50] ss:$12 sps:$4 sm:$0xff]  }
 0x472   : > { %2450 = vpow2.f32 %v1997_v4  ;;  %v3352_v34 = vld [vmem:[%s2886_s28 + $0x4c] ss:$12 sps:$4 sm:$0xff]   ;;  %v3357_v4 = vld [vmem:[%s2886_s28 + $0x48] ss:$12 sps:$4 sm:$0xff]   ;;  %v3365_v36 = vld [vmem:[%s2886_s28 + $0x64] ss:$12 sps:$4 sm:$0xff]  }
 0x473   : > { %2452 = vpow2.f32 %v1998_v41  ;;  %v3370_v37 = vld [vmem:[%s2886_s28 + $0x60] ss:$12 sps:$4 sm:$0xff]   ;;  %v3374_v38 = vld [vmem:[%s2886_s28 + $0x68] ss:$12 sps:$4 sm:$0xff]  }
 0x474   : > { %v3378_v41 = vld [vmem:[%s2886_s28 + $0x7c] ss:$12 sps:$4 sm:$0xff]  }
 0x47c   : > { %v2451_v42 = vpop.eup %2450 }
 0x47d   : > { %v1250_v43 = vadd.f32 1.0, %v2451_v42  ;;  %v2453_v44 = vpop.eup %2452  ;;  %v3383_v42 = vld [vmem:[%s2886_s28 + $0x78] ss:$12 sps:$4 sm:$0xff]  }
 0x47e   : > { %v1257_v51 = vadd.f32 1.0, %v2453_v44  ;;  %v3391_v44 = vld [vmem:[%s2886_s28 + $0x94] ss:$12 sps:$4 sm:$0xff]  }
 0x47f   : > { %2454 = vrcp.f32 %v1250_v43  ;;  %v3387_v43 = vld [vmem:[%s2886_s28 + $0x80] ss:$12 sps:$4 sm:$0xff]  }
 0x489   : > { %v2455_v46 = vpop.eup %2454 }
 0x48a   : > { %v1261_v47 = vmul.f32 %v2455_v46, %v1260_v45  ;;  %v3396_v45 = vld [vmem:[%s2886_s28 + $0x90] ss:$12 sps:$4 sm:$0xff]   ;;  %v3400_v46 = vld [vmem:[%s2886_s28 + $0x98] ss:$12 sps:$4 sm:$0xff]  }
 0x48c   : > { %v1262_v50 = vadd.f32 %v1261_v47, %v1164_v48  ;;  %v3404_v47 = vld [vmem:[%s2886_s28 + $0xac] ss:$12 sps:$4 sm:$0xff]   ;;  %v3409_v48 = vld [vmem:[%s2886_s28 + $0xa8] ss:$12 sps:$4 sm:$0xff]  }
 0x48e   : > { %2456 = vtanh.f32 %v1262_v50 }
 0x48f   : > { %2458 = vrcp.f32 %v1257_v51 }
 0x498   : > { %v2457_v52 = vpop.eup %2456 }
 0x499   : > { %v1264_v49 = vsub.f32 %v3206_v2, %v2457_v52  ;;  %v2459_v53 = vpop.eup %2458 }
 0x49b   : > { %v1265_v54 = vmul.f32 %v2459_v53, %v1264_v49 }
 0x49d   : > { %v3256_v55 = vadd.f32 %v2457_v52, %v1265_v54 }
 0x49f   : > { %v1267_v56 = vpack.c.bf16 %v3256_v55, %v3256_v55 }
 0x4a1   : > { %1270 = vst [vmem:[%s1269_s29] sm:$0xf] %v1267_v56  ;;  %1314 = vmatmul.mubr.bf16.vlgmr.msra.gmra.mrb[32].mxu0 %v1267_v56  ;;  %2235 = vmatmul.mubr.bf16.vlgmr.msra.gmra.mrb[24].mxu1 %v1267_v56  ;;  %s1394_s29 = scalar_lea.vmem [#allocation2], %s2038_s15  ;;  %s1624_s15 = sshra.s32 %s3475_s30, 3 }
 0x4a2   : > { %1399 = vmatpush1.bf16.msra.mxu0 %v3262_v57  ;;  %2239 = vmatpush3.bf16.msra.mxu1 %v2948_v18  ;;  %v1395_v50 = vld [vmem:[%s1394_s29] sm:$0xff] }
 0x4a3   : > { %1400 = vmatprep.subr.bf16.mxu0 %v3267_v58  ;;  %2240 = vmatprep.subr.bf16.mxu1 %v2678_v11 }
 0x4a4   : > { %1430 = vmatprep.mubr.bf16.mxu0 %v2677_v0  ;;  %2254 = vmatprep.mubr.msk.bf16.mxu1 %vm2679_vm1, %v2678_v11 }
 0x4a6   : > { %1401 = vmatpush1.bf16.msra.mxu0 %v2911_v8  ;;  %2241 = vmatpush3.bf16.msra.mxu1 %v2952_v19  ;;  %v3301_v8 = vld [vmem:[%s2886_s28 + $0x4] ss:$12 sps:$4 sm:$0xff]  }
 0x4a7   : > { %1402 = vmatprep.subr.bf16.mxu0 %v2915_v9  ;;  %2242 = vmatprep.subr.bf16.mxu1 %v2678_v11  ;;  %v1278_v9 = vld [vmem:[%s1277_s12] sm:$0xff] }
 0x4aa   : > { %1403 = vmatpush1.bf16.msra.mxu0 %v2923_v12  ;;  %2243 = vmatpush3.bf16.msra.mxu1 %v2969_v22 }
 0x4ab   : > { %1404 = vmatprep.subr.bf16.mxu0 %v2931_v14  ;;  %2244 = vmatprep.subr.bf16.mxu1 %v2678_v11 }
 0x4ae   : > { %1405 = vmatpush1.bf16.msra.mxu0 %v2936_v15  ;;  %2245 = vmatpush3.bf16.msra.mxu1 %v2983_v25 }
 0x4af   : > { %1406 = vmatprep.subr.bf16.mxu0 %v2941_v16  ;;  %2246 = vmatprep.subr.bf16.mxu1 %v2678_v11 }
 0x4b2   : > { %1407 = vmatpush1.bf16.msra.mxu0 %v2956_v20  ;;  %2247 = vmatpush3.bf16.msra.mxu1 %v2997_v28 }
 0x4b3   : > { %1408 = vmatprep.subr.bf16.mxu0 %v2962_v21  ;;  %2248 = vmatprep.subr.bf16.mxu1 %v2678_v11 }
 0x4b6   : > { %1409 = vmatpush1.bf16.msra.mxu0 %v2974_v23  ;;  %2249 = vmatpush3.bf16.msra.mxu1 %v3008_v30 }
 0x4b7   : > { %1410 = vmatprep.subr.bf16.mxu0 %v2978_v24  ;;  %2250 = vmatprep.subr.bf16.mxu1 %v2678_v11  ;;  %v1279_v24 = vld [vmem:[%s1277_s12 + $0x8] sm:$0xff]  ;;  %s1507_s12 = sshra.s32 %s3464_s14, 3  ;;  %s1759_s14 = sshll.u32 %s3106_s17, 4  ;;  %s3491_s14 = int_to_ptr.vmem [resolvable:$true] %s1759_s14 }
 0x4b8   : > { %s2041_s1 = smul.u32 24, %s1507_s12 }
 0x4ba   : > { %1411 = vmatpush1.bf16.msra.mxu0 %v2987_v26  ;;  %2251 = vmatpush3.bf16.msra.mxu1 %v3015_v32 }
 0x4bb   : > { %1412 = vmatprep.subr.bf16.mxu0 %v2992_v27  ;;  %2252 = vmatprep.subr.bf16.mxu1 %v2678_v11 }
 0x4be   : > { %1413 = vmatpush1.bf16.msra.mxu0 %v3001_v29  ;;  %2253 = vmatpush3.bf16.msra.mxu1 %v3023_v33 }
 0x4bf   : > { %1515 = vmatprep.subr.bf16.mxu0 %v3301_v8  ;;  %2258 = vmatprep.subr.bf16.mxu1 %v2678_v11 }
 0x574   : > { %v1315_v12 = vpop.f32.mrb[32].mxu0  ;;  %v1356_v14 = vpop.f32.mrb[24].mxu1 }
 0x575   : > { %v1362_v15 = vadd.f32 %v1315_v12, %v1278_v9  ;;  %v1317_v16 = vpop.f32.mrb[33].mxu0  ;;  %v2236_v18 = vpop.f32.mrb[25].mxu1  ;;  %v1376_v30 = vadd.f32 %v3099_v13, %v1356_v14  ;;  %v1396_v12 = vld [vmem:[%s1394_s29 + $0x8] sm:$0xff] }
 0x576   : > { %v1319_v19 = vpop.f32.mrb[34].mxu0  ;;  %v1359_v20 = vpop.f32.mrb[26].mxu1  ;;  %v1369_v25 = vadd.f32 %v1317_v16, %v1279_v24 }
 0x577   : > { %v2002_v21 = vmul.f32 -1.442695, %v1362_v15  ;;  %v1320_v22 = vpop.f32.mrb[35].mxu0  ;;  %v2237_v23 = vpop.f32.mrb[27].mxu1 }
 0x578   : > { %v2003_v26 = vmul.f32 -1.442695, %v1369_v25  ;;  %v1397_v23 = vld [vmem:[%s1394_s29 + $0x10] sm:$0xff]  ;;  %s2044_s29 = smul.u32 24, %s1624_s15 }
 0x579   : > { %2460 = vpow2.f32 %v2002_v21 }
 0x57a   : > { %2462 = vpow2.f32 %v2003_v26  ;;  %s1628_s27 = scalar_lea.vmem [#allocation2], %s2044_s29 }
 0x583   : > { %v2461_v27 = vpop.eup %2460 }
 0x584   : > { %v1366_v28 = vadd.f32 1.0, %v2461_v27  ;;  %v2463_v29 = vpop.eup %2462 }
 0x585   : > { %v1373_v39 = vadd.f32 1.0, %v2463_v29 }
 0x586   : > { %2464 = vrcp.f32 %v1366_v28 }
 0x590   : > { %v2465_v32 = vpop.eup %2464 }
 0x591   : > { %v1377_v59 = vmul.f32 %v2465_v32, %v1376_v30 }
 0x593   : > { %v1378_v61 = vadd.f32 %v1377_v59, %v1280_v60 }
 0x595   : > { %2466 = vtanh.f32 %v1378_v61 }
 0x596   : > { %2468 = vrcp.f32 %v1373_v39 }
 0x59f   : > { %v2467_v62 = vpop.eup %2466 }
 0x5a0   : > { %v1380_v63 = vsub.f32 %v3256_v55, %v2467_v62  ;;  %v2469_v1 = vpop.eup %2468 }
 0x5a2   : > { %v1381_v2 = vmul.f32 %v2469_v1, %v1380_v63 }
 0x5a4   : > { %v3315_v3 = vadd.f32 %v2467_v62, %v1381_v2 }
 0x5a6   : > { %v1383_v5 = vpack.c.bf16 %v3315_v3, %v3315_v3 }
 0x5a8   : > { %1386 = vst [vmem:[%s1385_s9] sm:$0xf] %v1383_v5  ;;  %1431 = vmatmul.mubr.bf16.vlgmr.msra.gmra.mrb[36].mxu0 %v1383_v5  ;;  %2255 = vmatmul.mubr.bf16.vlgmr.msra.gmra.mrb[28].mxu1 %v1383_v5  ;;  %s1511_s9 = scalar_lea.vmem [#allocation2], %s2041_s1 }
 0x5a9   : > { %1516 = vmatpush1.bf16.msra.mxu0 %v3262_v57  ;;  %2259 = vmatpush3.bf16.msra.mxu1 %v3322_v6 }
 0x5aa   : > { %1517 = vmatprep.subr.bf16.mxu0 %v3267_v58  ;;  %2260 = vmatprep.subr.bf16.mxu1 %v2678_v11 }
 0x5ab   : > { %1547 = vmatprep.mubr.bf16.mxu0 %v2677_v0  ;;  %2274 = vmatprep.mubr.msk.bf16.mxu1 %vm2679_vm1, %v2678_v11 }
 0x5ad   : > { %1518 = vmatpush1.bf16.msra.mxu0 %v3331_v40  ;;  %2261 = vmatpush3.bf16.msra.mxu1 %v3335_v7 }
 0x5ae   : > { %1519 = vmatprep.subr.bf16.mxu0 %v3339_v10  ;;  %2262 = vmatprep.subr.bf16.mxu1 %v2678_v11 }
 0x5b1   : > { %1520 = vmatpush1.bf16.msra.mxu0 %v3344_v17  ;;  %2263 = vmatpush3.bf16.msra.mxu1 %v3348_v31 }
 0x5b2   : > { %1521 = vmatprep.subr.bf16.mxu0 %v3352_v34  ;;  %2264 = vmatprep.subr.bf16.mxu1 %v2678_v11 }
 0x5b5   : > { %1522 = vmatpush1.bf16.msra.mxu0 %v3357_v4  ;;  %2265 = vmatpush3.bf16.msra.mxu1 %v3361_v35 }
 0x5b6   : > { %1523 = vmatprep.subr.bf16.mxu0 %v3365_v36  ;;  %2266 = vmatprep.subr.bf16.mxu1 %v2678_v11 }
 0x5b9   : > { %1524 = vmatpush1.bf16.msra.mxu0 %v3370_v37  ;;  %2267 = vmatpush3.bf16.msra.mxu1 %v3374_v38 }
 0x5ba   : > { %1525 = vmatprep.subr.bf16.mxu0 %v3378_v41  ;;  %2268 = vmatprep.subr.bf16.mxu1 %v2678_v11 }
 0x5bd   : > { %1526 = vmatpush1.bf16.msra.mxu0 %v3383_v42  ;;  %2269 = vmatpush3.bf16.msra.mxu1 %v3387_v43 }
 0x5be   : > { %1527 = vmatprep.subr.bf16.mxu0 %v3391_v44  ;;  %2270 = vmatprep.subr.bf16.mxu1 %v2678_v11 }
 0x5c1   : > { %1528 = vmatpush1.bf16.msra.mxu0 %v3396_v45  ;;  %2271 = vmatpush3.bf16.msra.mxu1 %v3400_v46 }
 0x5c2   : > { %1529 = vmatprep.subr.bf16.mxu0 %v3404_v47  ;;  %2272 = vmatprep.subr.bf16.mxu1 %v2678_v11 }
 0x5c5   : > { %1530 = vmatpush1.bf16.msra.mxu0 %v3409_v48  ;;  %2273 = vmatpush3.bf16.msra.mxu1 %v3023_v33 }
 0x5c6   : > { %1632 = vmatprep.subr.bf16.mxu0 %v3301_v8  ;;  %2278 = vmatprep.subr.bf16.mxu1 %v2678_v11 }
 0x67b   : > { %v1432_v51 = vpop.f32.mrb[36].mxu0  ;;  %v1473_v52 = vpop.f32.mrb[28].mxu1 }
 0x67c   : > { %v1479_v49 = vadd.f32 %v1432_v51, %v1395_v50  ;;  %v1434_v53 = vpop.f32.mrb[37].mxu0  ;;  %v2256_v54 = vpop.f32.mrb[29].mxu1  ;;  %v1493_v20 = vadd.f32 %v3099_v13, %v1473_v52 }
 0x67d   : > { %v1436_v33 = vpop.f32.mrb[38].mxu0  ;;  %v1476_v55 = vpop.f32.mrb[30].mxu1  ;;  %v1486_v14 = vadd.f32 %v1434_v53, %v1396_v12 }
 0x67e   : > { %v2007_v56 = vmul.f32 -1.442695, %v1479_v49  ;;  %v1437_v8 = vpop.f32.mrb[39].mxu0  ;;  %v2257_v9 = vpop.f32.mrb[31].mxu1  ;;  %v1630_v33 = vld [vmem:[%s1628_s27 + $0x8] sm:$0xff] }
 0x67f   : > { %v2008_v15 = vmul.f32 -1.442695, %v1486_v14  ;;  %v2524_v14 = vld [vmem:[%s3096_s25] ss:$0 sm:$0xff] }
 0x680   : > { %2470 = vpow2.f32 %v2007_v56 }
 0x681   : > { %2472 = vpow2.f32 %v2008_v15 }
 0x68a   : > { %v2471_v16 = vpop.eup %2470 }
 0x68b   : > { %v1483_v18 = vadd.f32 1.0, %v2471_v16  ;;  %v2473_v19 = vpop.eup %2472 }
 0x68c   : > { %v1490_v25 = vadd.f32 1.0, %v2473_v19  ;;  %v1631_v19 = vld [vmem:[%s1628_s27 + $0x10] sm:$0xff] }
 0x68d   : > { %2474 = vrcp.f32 %v1483_v18 }
 0x697   : > { %v2475_v21 = vpop.eup %2474 }
 0x698   : > { %v1494_v22 = vmul.f32 %v2475_v21, %v1493_v20 }
 0x69a   : > { %v1495_v24 = vadd.f32 %v1494_v22, %v1397_v23 }
 0x69c   : > { %2476 = vtanh.f32 %v1495_v24 }
 0x69d   : > { %2478 = vrcp.f32 %v1490_v25 }
 0x6a6   : > { %v2477_v26 = vpop.eup %2476 }
 0x6a7   : > { %v1497_v27 = vsub.f32 %v3315_v3, %v2477_v26  ;;  %v2479_v28 = vpop.eup %2478  ;;  %v1513_v3 = vld [vmem:[%s1511_s9 + $0x8] sm:$0xff] }
 0x6a9   : > { %v1498_v29 = vmul.f32 %v2479_v28, %v1497_v27 }
 0x6ab   : > { %v3425_v30 = vadd.f32 %v2477_v26, %v1498_v29 }
 0x6ad   : > { %v1500_v32 = vpack.c.bf16 %v3425_v30, %v3425_v30 }
 0x6af   : > { %1503 = vst [vmem:[%s1502_s24] sm:$0xf] %v1500_v32  ;;  %1548 = vmatmul.mubr.bf16.vlgmr.msra.gmra.mrb[40].mxu0 %v1500_v32  ;;  %2275 = vmatmul.mubr.bf16.vlgmr.msra.gmra.mrb[32].mxu1 %v1500_v32  ;;  %s2019_s24 = sshll.u32 %s1624_s15, 2 }
 0x6b0   : > { %1633 = vmatpush1.bf16.msra.mxu0 %v3262_v57  ;;  %2279 = vmatpush3.bf16.msra.mxu1 %v3322_v6  ;;  %v1512_v57 = vld [vmem:[%s1511_s9] sm:$0xff]  ;;  %s1736_s25 = scalar_lea.vmem %s3106_s17, %s2019_s24 [#allocation9] }
 0x6b1   : > { %1634 = vmatprep.subr.bf16.mxu0 %v3267_v58  ;;  %2280 = vmatprep.subr.bf16.mxu1 %v2678_v11 }
 0x6b2   : > { %1664 = vmatprep.mubr.bf16.mxu0 %v2677_v0  ;;  %2294 = vmatprep.mubr.msk.bf16.mxu1 %vm2679_vm1, %v2678_v11  ;;  %v2523_v0 = vld [vmem:[%s2886_s28 + $0xb0] ss:$12 sps:$4 sm:$0xff]   ;;  %s2014_s28 = sshll.u32 %s1507_s12, 2 }
 0x6b3   : > { %s1619_s11 = scalar_lea.vmem %s3106_s17, %s2014_s28 [#allocation9]  ;;  %s1740_s28 = scalar_lea.sflag [#allocation6], %s2876_s13 }
 0x6b4   : > { %1635 = vmatpush1.bf16.msra.mxu0 %v3331_v40  ;;  %2281 = vmatpush3.bf16.msra.mxu1 %v3335_v7  ;;  %s2589_s17 = sshll.u32 %s2681_s21, 4  ;;  %s2590_s17 = int_to_ptr.vmem [resolvable:$false] %s2589_s17 }
 0x6b5   : > { %1636 = vmatprep.subr.bf16.mxu0 %v3339_v10  ;;  %2282 = vmatprep.subr.bf16.mxu1 %v2678_v11  ;;  %s2591_s16 = scalar_lea.vmem %s2590_s17, 1024  ;;  %p2592_p10 = scmp.lt.s32.totalorder %s3491_s14, %s2590_s17 }
 0x6b8   : > { %1637 = vmatpush1.bf16.msra.mxu0 %v3344_v17  ;;  %2283 = vmatpush3.bf16.msra.mxu1 %v3348_v31 }
 0x6b9   : > { %1638 = vmatprep.subr.bf16.mxu0 %v3352_v34  ;;  %2284 = vmatprep.subr.bf16.mxu1 %v2678_v11 }
 0x6bc   : > { %1639 = vmatpush1.bf16.msra.mxu0 %v3357_v4  ;;  %2285 = vmatpush3.bf16.msra.mxu1 %v3361_v35  ;;  %v1514_v4 = vld [vmem:[%s1511_s9 + $0x10] sm:$0xff]  ;;  %s3489_s9 = scalar_lea.hbm %s3545_s5, %s2045_s10 }
 0x6bd   : > { %1640 = vmatprep.subr.bf16.mxu0 %v3365_v36  ;;  %2286 = vmatprep.subr.bf16.mxu1 %v2678_v11 }
 0x6c0   : > { %1641 = vmatpush1.bf16.msra.mxu0 %v3370_v37  ;;  %2287 = vmatpush3.bf16.msra.mxu1 %v3374_v38 }
 0x6c1   : > { %1642 = vmatprep.subr.bf16.mxu0 %v3378_v41  ;;  %2288 = vmatprep.subr.bf16.mxu1 %v2678_v11 }
 0x6c4   : > { %1643 = vmatpush1.bf16.msra.mxu0 %v3383_v42  ;;  %2289 = vmatpush3.bf16.msra.mxu1 %v3387_v43 }
 0x6c5   : > { %1644 = vmatprep.subr.bf16.mxu0 %v3391_v44  ;;  %2290 = vmatprep.subr.bf16.mxu1 %v2678_v11 }
 0x6c8   : > { %1645 = vmatpush1.bf16.msra.mxu0 %v3396_v45  ;;  %2291 = vmatpush3.bf16.msra.mxu1 %v3400_v46 }
 0x6c9   : > { %1646 = vmatprep.subr.bf16.mxu0 %v3404_v47  ;;  %2292 = vmatprep.subr.bf16.mxu1 %v2678_v11 }
 0x6cc   : > { %1647 = vmatpush1.bf16.msra.mxu0 %v3409_v48  ;;  %2293 = vmatpush3.bf16.msra.mxu1 %v2523_v0 }
 0x782   : > { %v1549_v58 = vpop.f32.mrb[40].mxu0  ;;  %v1590_v59 = vpop.f32.mrb[32].mxu1 }
 0x783   : > { %v1596_v60 = vadd.f32 %v1549_v58, %v1512_v57  ;;  %v1551_v61 = vpop.f32.mrb[41].mxu0  ;;  %v2276_v39 = vpop.f32.mrb[33].mxu1  ;;  %v1610_v17 = vadd.f32 %v3099_v13, %v1590_v59  ;;  %v1629_v13 = vld [vmem:[%s1628_s27] sm:$0xff] }
 0x784   : > { %v1553_v11 = vpop.f32.mrb[42].mxu0  ;;  %v1593_v62 = vpop.f32.mrb[34].mxu1  ;;  %v1603_v5 = vadd.f32 %v1551_v61, %v1513_v3 }
 0x785   : > { %v2012_v63 = vmul.f32 -1.442695, %v1596_v60  ;;  %v1554_v1 = vpop.f32.mrb[43].mxu0  ;;  %v2277_v2 = vpop.f32.mrb[35].mxu1 }
 0x786   : > { %v2013_v6 = vmul.f32 -1.442695, %v1603_v5 }
 0x787   : > { %2480 = vpow2.f32 %v2012_v63 }
 0x788   : > { %2482 = vpow2.f32 %v2013_v6 }
 0x791   : > { %v2481_v40 = vpop.eup %2480 }
 0x792   : > { %v1600_v7 = vadd.f32 1.0, %v2481_v40  ;;  %v2483_v10 = vpop.eup %2482 }
 0x793   : > { %v1607_v36 = vadd.f32 1.0, %v2483_v10 }
 0x794   : > { %2484 = vrcp.f32 %v1600_v7 }
 0x79e   : > { %v2485_v31 = vpop.eup %2484 }
 0x79f   : > { %v1611_v34 = vmul.f32 %v2485_v31, %v1610_v17 }
 0x7a1   : > { %v1612_v35 = vadd.f32 %v1611_v34, %v1514_v4 }
 0x7a3   : > { %2486 = vtanh.f32 %v1612_v35 }
 0x7a4   : > { %2488 = vrcp.f32 %v1607_v36 }
 0x7ad   : > { %v2487_v37 = vpop.eup %2486 }
 0x7ae   : > { %v1614_v38 = vsub.f32 %v3425_v30, %v2487_v37  ;;  %v2489_v41 = vpop.eup %2488 }
 0x7b0   : > { %v1615_v42 = vmul.f32 %v2489_v41, %v1614_v38 }
 0x7b2   : > { %v1616_v43 = vadd.f32 %v2487_v37, %v1615_v42 }
 0x7b4   : > { %v1617_v44 = vpack.c.bf16 %v1616_v43, %v1616_v43 }
 0x7b6   : > { %1620 = vst [vmem:[%s1619_s11] sm:$0xf] %v1617_v44  ;;  %1665 = vmatmul.mubr.bf16.vlgmr.msra.gmra.mrb[44].mxu0 %v1617_v44  ;;  %2295 = vmatmul.mubr.bf16.vlgmr.msra.gmra.mrb[36].mxu1 %v1617_v44  ;;  %s2585_s11 = scalar_lea.vmem %s3491_s14, 512 }
 0x7b7   : > { %p2586_p3 = scmp.ne.s32.totalorder %s3491_s14, %s2585_s11  ;;  %p2593_p9 = scmp.lt.s32.totalorder %s2591_s16, %s2585_s11 }
 0x7b9   : > { %p2587_p13 = pnand %p2586_p3, %p3560_p12  ;;  %p2594_p11 = por %p2593_p9, %p2592_p10 }
 0x7bb   : > { %p2588_p7 = pneg %p2587_p13 }
 0x7bd   : > { %p2595_p1 = pnand %p2594_p11, %p2588_p7 }
 0x889   : > { %v1666_v45 = vpop.f32.mrb[44].mxu0  ;;  %v1707_v46 = vpop.f32.mrb[36].mxu1 }
 0x88a   : > { %v1713_v47 = vadd.f32 %v1666_v45, %v1629_v13  ;;  %v1668_v48 = vpop.f32.mrb[45].mxu0  ;;  %v2296_v50 = vpop.f32.mrb[37].mxu1  ;;  %v1727_v15 = vadd.f32 %v2524_v14, %v1707_v46 }
 0x88b   : > { %v1670_v51 = vpop.f32.mrb[46].mxu0  ;;  %v1710_v52 = vpop.f32.mrb[38].mxu1  ;;  %v1720_v55 = vadd.f32 %v1668_v48, %v1630_v33 }
 0x88c   : > { %v2017_v49 = vmul.f32 -1.442695, %v1713_v47  ;;  %v1671_v53 = vpop.f32.mrb[47].mxu0  ;;  %v2297_v54 = vpop.f32.mrb[39].mxu1 }
 0x88d   : > { %v2018_v56 = vmul.f32 -1.442695, %v1720_v55 }
 0x88e   : > { %2490 = vpow2.f32 %v2017_v49 }
 0x88f   : > { %2492 = vpow2.f32 %v2018_v56 }
 0x898   : > { %v2491_v8 = vpop.eup %2490 }
 0x899   : > { %v1717_v9 = vadd.f32 1.0, %v2491_v8  ;;  %v2493_v12 = vpop.eup %2492 }
 0x89a   : > { %v1724_v21 = vadd.f32 1.0, %v2493_v12 }
 0x89b   : > { %2494 = vrcp.f32 %v1717_v9 }
 0x8a5   : > { %v2495_v16 = vpop.eup %2494 }
 0x8a6   : > { %v1728_v18 = vmul.f32 %v2495_v16, %v1727_v15 }
 0x8a8   : > { %v1729_v20 = vadd.f32 %v1728_v18, %v1631_v19 }
 0x8aa   : > { %2496 = vtanh.f32 %v1729_v20 }
 0x8ab   : > { %2498 = vrcp.f32 %v1724_v21 }
 0x8b4   : > { %v2497_v22 = vpop.eup %2496 }
 0x8b5   : > { %v1731_v23 = vsub.f32 %v1616_v43, %v2497_v22  ;;  %v2499_v24 = vpop.eup %2498 }
 0x8b7   : > { %v1732_v25 = vmul.f32 %v2499_v24, %v1731_v23 }
 0x8b9   : > { %v1733_v26 = vadd.f32 %v2497_v22, %v1732_v25 }
 0x8bb   : > { %v1734_v27 = vpack.c.bf16 %v1733_v26, %v1733_v26 }
 0x8bd   : > { %1737 = vst [vmem:[%s1736_s25] sm:$0xf] %v1734_v27 }
 0x8be   : > { %2598 = shalt.err (!%p2595_p1)
}
 0x8bf   : > { %s2599_s30 = scalar_lea.hbm %s3489_s9, 512  ;;  %s2603_s27 = scalar_lea.hbm %s3545_s5, 1024 }
 0x8c0   : > { %p2600_p5 = scmp.ne.s32.totalorder %s3489_s9, %s2599_s30  ;;  %p2604_p6 = scmp.lt.u32.totalorder %s3489_s9, %s3545_s5 }
 0x8c1   : > { %p2605_p8 = scmp.lt.u32.totalorder %s2603_s27, %s2599_s30  ;;  %p2607_p3 = scmp.lt.u32.totalorder %s2599_s30, %s3489_s9 }
 0x8c2   : > { %p2601_p2 = pnand %p2600_p5, %p3560_p12 }
 0x8c3   : > { %p2606_p0 = por %p2605_p8, %p2604_p6 }
 0x8c4   : > { %p2602_p4 = pneg %p2601_p2 }
 0x8c5   : > { %p2608_p13 = por %p2607_p3, %p2606_p0 }
 0x8c7   : > { %p2609_p7 = pnand %p2608_p13, %p2602_p4 }
 0x8c9   : > { %2612 = shalt.err (!%p2609_p7)
}
 0x8ca   : > { %s2682_s25 = smov 64   ;;  %s2683_s12 = smov 4  }
 0x8cb   : > { %2309 = dma.vmem_to_hbm [thread:$0]  (%p3560_p12), %s3491_s14, 512, %s3489_s9, %s1740_s28, %s2682_s25, %s2682_s25, %s2683_s12  }
 0x8cc PF: > { %s1774_s1 = sand.u32 1, %s2651_s18   ;;  %p3561_p10 = scmp.ne.s32.totalorder %s3553_s8, 0 }
 0x8cd   : > { %p3562_p9 = scmp.ge.s32.totalorder %s2671_s23, 2  ;;  %s1775_s11 = scalar_lea.sflag [#allocation6], %s1774_s1 }
 0x8cf   : > { %p2319_p11 = pnand %p3562_p9, %p3561_p10 }
 0x8d1   : > { %2646 = dma.done.wait (!%p2319_p11), %s1775_s11, 512  }
 0x8d2   : > { %2648 = vsyncadd (!%p2319_p11), %s1775_s11, 4294966784  ;;  %s24_s23 = sadd.s32 1, %s2671_s23   ;;  %s3563_s18 = smov %s2655_s19 }
 0x8d3   : > { %p21_p1 = scmp.ge.s32.totalorder %s24_s23, 4   ;;  %s3564_s19 = smov %s2659_s20 }
 0x8d4   : > { %s3565_s20 = smov %s2770_s7  ;;  %s3566_s21 = smov %s2667_s22 }
 0x8d5   : > { %s3567_s22 = smov %s3569_s26  ;;  %23 = sbr.rel (!%p21_p1) target bundleno = 10 (0xa), region = 127 }
 0x8dc   :  { %1780 = vsyncpa [#allocation5], 1 }
 0x8dd   :  { %1782 = vsyncpa [#allocation5 + $0x1], 1 }
 0x8de   :  { %1783 = vsyncpa [#allocation8], 1 }
 0x8df   :  { %1785 = vsyncpa [#allocation8 + $0x1], 1 }
 0x8e0   :  { %1786 = vsyncpa [#allocation6], 1 }
 0x8e1   :  { %1788 = vsyncpa [#allocation6 + $0x1], 1 }

</bundles_post_ra>
